<compile_context>
chip_gen: v7x
topology: tpu7x:2x2x1
jax: 0.10.0
libtpu: 0.0.40
codegen_flags: <defaults>
</compile_context>

<pallas_src>
import math
import functools

import numpy as np
import jax
import jax.numpy as jnp
from jax import lax
from jax.experimental import pallas as pl
from jax.experimental.pallas import tpu as pltpu

# ----------------------------- config (small) -------------------------------
VOCAB_SIZE = 64
MAX_SEQ_LEN = 16
EMBED_DIM = 32
NUM_HEADS = 4
NUM_LAYERS = 2
FF_MULT = 4
HIDDEN_DIM = FF_MULT * EMBED_DIM   # 128
VOCAB_PAD = 128                    # lane-dense LM-head output (sliced in wrapper)
NEG_INF = -1e30


# ------------------------------ in-kernel math ------------------------------
def _layernorm(x, w, b, eps=1e-5):
    # x: (R, C), w/b: (1, C) -- biased variance, same as torch.nn.LayerNorm
    mu = jnp.mean(x, axis=-1, keepdims=True)
    var = jnp.mean((x - mu) ** 2, axis=-1, keepdims=True)
    return (x - mu) * lax.rsqrt(var + eps) * w + b


def _gelu_tanh(x):
    # matches torch nn.GELU(approximate='tanh')
    c = math.sqrt(2.0 / math.pi)
    return 0.5 * x * (1.0 + jnp.tanh(c * (x + 0.044715 * x * x * x)))


def _mm(a_bf16, w_bf16):
    # bf16 MXU matmul with f32 accumulation (inputs already cast)
    return jnp.dot(a_bf16, w_bf16, preferred_element_type=jnp.float32)


# ------------------------------ fused GPT kernel ----------------------------
def gpt_kernel(idx_ref, bias_ref, wte_ref, pos_ref,
               ln1w_ref, ln1b_ref, wqkv_ref, bqkv_ref, wo_ref, bo_ref,
               ln2w_ref, ln2b_ref, wfc_ref, bfc_ref, wp2_ref, bp2_ref,
               lnfw_ref, lnfb_ref, wlm_ref,
               o_ref, *, num_heads, num_layers):
    R = idx_ref.shape[0]                # rows this step = (batches per step)*T
    V, C = wte_ref.shape
    hd = C // num_heads

    # ---- token embedding (bf16 one-hot matmul) + positional embedding ------
    ids = idx_ref[...]                                       # (R, 1) int32
    viota = lax.broadcasted_iota(jnp.int32, (R, V), 1)
    onehot = jnp.where(viota == ids, 1.0, 0.0).astype(jnp.bfloat16)
    x = _mm(onehot, wte_ref[...]) + pos_ref[...]             # (R, C) f32

    # additive mask: 0 where attention allowed (causal, same batch), -1e30 else
    attn_bias = bias_ref[...]                                # (R, R) f32

    for l in range(num_layers):
        # ---------------- causal self-attention ----------------
        h = _layernorm(x, ln1w_ref[l], ln1b_ref[l])
        # single fused QKV matmul; 1/sqrt(hd) is pre-baked into Q columns
        qkv = _mm(h.astype(jnp.bfloat16), wqkv_ref[l]) + bqkv_ref[l]  # (R, 3C)
        qkv_bf = qkv.astype(jnp.bfloat16)                    # hoisted cast
        wo_l = wo_ref[l]                                     # (H, hd, C) bf16

        acc = jnp.zeros((R, C), jnp.float32)
        for hh in range(num_heads):
            c0 = hh * hd
            q_h = qkv_bf[:, c0:c0 + hd]                      # (R, hd)
            k_h = qkv_bf[:, C + c0:C + c0 + hd]
            v_h = qkv_bf[:, 2 * C + c0:2 * C + c0 + hd]

            s = lax.dot_general(q_h, k_h, (((1,), (1,)), ((), ())),
                                preferred_element_type=jnp.float32)   # (R, R)
            s = s + attn_bias
            s = s - jnp.max(s, axis=-1, keepdims=True)
            e = jnp.exp(s)
            p = e * pl.reciprocal(jnp.sum(e, axis=-1, keepdims=True),
                                  approx=True)
            y_h = _mm(p.astype(jnp.bfloat16), v_h)           # (R, hd)
            # concat folded into the output projection (MXU accumulation)
            acc = acc + _mm(y_h.astype(jnp.bfloat16), wo_l[hh])
        x = x + acc + bo_ref[l]                              # residual 1

        # ------------------------- MLP --------------------------
        h2 = _layernorm(x, ln2w_ref[l], ln2b_ref[l])
        m = _mm(h2.astype(jnp.bfloat16), wfc_ref[l]) + bfc_ref[l]     # (R, Hid)
        m = _gelu_tanh(m)
        m = _mm(m.astype(jnp.bfloat16), wp2_ref[l]) + bp2_ref[l]      # (R, C)
        x = x + m                                            # residual 2

    # ---- final LN + LM head (lane-dense, vocab padded to 128) ----
    hf = _layernorm(x, lnfw_ref[...], lnfb_ref[...])
    o_ref[...] = _mm(hf.astype(jnp.bfloat16), wlm_ref[...])  # (R, VOCAB_PAD)


# ------------------------------- wrapper -------------------------------------
def _const_spec(shape):
    n = len(shape)
    return pl.BlockSpec(shape, lambda i, n=n: (0,) * n)


@functools.partial(jax.jit, static_argnames=("grid_steps",))
def gpt_forward(idx, params, grid_steps=1):
    # grid_steps=1: single fused step (best on single-TC v5e/v6e).
    # grid_steps=2: one step per TensorCore on v7x (requires B % 2 == 0).
    B, T = idx.shape
    assert T <= MAX_SEQ_LEN
    assert B % grid_steps == 0
    C, Hid, L, H = EMBED_DIM, HIDDEN_DIM, NUM_LAYERS, NUM_HEADS
    hd = C // H
    BG = B // grid_steps          # batches folded into sublanes per step
    R = BG * T                    # activation rows per step

    idx_flat = idx.reshape(B * T, 1).astype(jnp.int32)
    pos_emb = jnp.tile(params['wpe'][:T], (B, 1))            # (B*T, C) f32

    # compile-time additive attention bias: causal within each batch,
    # -inf across batches (batches share the sublane axis).
    r = np.arange(R)[:, None]
    c = np.arange(R)[None, :]
    allowed = (r // T == c // T) & (c <= r)
    attn_bias = jnp.asarray(np.where(allowed, 0.0, NEG_INF), dtype=jnp.float32)

    kern = functools.partial(gpt_kernel, num_heads=H, num_layers=L)

    in_specs = [
        pl.BlockSpec((R, 1), lambda i: (i, 0)),              # idx (per step)
        _const_spec((R, R)),                                 # attn bias
        _const_spec((VOCAB_SIZE, C)),                        # wte (bf16)
        pl.BlockSpec((R, C), lambda i: (i, 0)),              # pos emb (per step)
        _const_spec((L, 1, C)), _const_spec((L, 1, C)),      # ln1 w, b
        _const_spec((L, C, 3 * C)), _const_spec((L, 1, 3 * C)),   # fused QKV
        _const_spec((L, H, hd, C)), _const_spec((L, 1, C)),  # attn c_proj
        _const_spec((L, 1, C)), _const_spec((L, 1, C)),      # ln2 w, b
        _const_spec((L, C, Hid)), _const_spec((L, 1, Hid)),  # c_fc
        _const_spec((L, Hid, C)), _const_spec((L, 1, C)),    # mlp c_proj
        _const_spec((1, C)), _const_spec((1, C)),            # lnf w, b
        _const_spec((C, VOCAB_PAD)),                         # lm head (padded)
    ]

    out = pl.pallas_call(
        kern,
        grid=(grid_steps,),
        out_shape=jax.ShapeDtypeStruct((B * T, VOCAB_PAD), jnp.float32),
        in_specs=in_specs,
        out_specs=pl.BlockSpec((R, VOCAB_PAD), lambda i: (i, 0)),
        compiler_params=pltpu.CompilerParams(
            dimension_semantics=("parallel",)),
    )(idx_flat, attn_bias, params['wte'], pos_emb,
      params['ln1_w'], params['ln1_b'],
      params['w_qkv'], params['b_qkv'],
      params['w_attnproj'], params['b_attnproj'],
      params['ln2_w'], params['ln2_b'],
      params['w_fc'], params['b_fc'],
      params['w_mlpproj'], params['b_mlpproj'],
      params['lnf_w'], params['lnf_b'], params['w_lm'])

    return out.reshape(B, T, VOCAB_PAD)[:, :, :VOCAB_SIZE]   # (B, T, V)


# ------------------------------- parameters ---------------------------------
def init_params(key):
    std = 0.02
    proj_std = 0.02 / math.sqrt(2 * NUM_LAYERS)
    C, Hid, L, V, H = EMBED_DIM, HIDDEN_DIM, NUM_LAYERS, VOCAB_SIZE, NUM_HEADS
    hd = C // H
    scale = 1.0 / math.sqrt(hd)

    keys = iter(jax.random.split(key, 3 + 4 * L))

    def normal(shape, s):
        return s * jax.random.normal(next(keys), shape, dtype=jnp.float32)

    wte = normal((V, C), std)
    wpe = normal((MAX_SEQ_LEN, C), std)
    # lm_head: nn.Linear(C, V, bias=False) -> weight (V, C); store (C, V) padded
    w_lm = jnp.pad(normal((V, C), std).T, ((0, 0), (0, VOCAB_PAD - V)))

    wqkv, wo, wfc, wp2 = [], [], [], []
    for _ in range(L):
        w_attn = normal((3 * C, C), std)          # torch c_attn weight (3C, C)
        w = w_attn.T                              # (C, 3C) for x @ W, cols [q|k|v]
        w = w.at[:, :C].multiply(scale)           # bake 1/sqrt(hd) into Q proj
        wqkv.append(w)
        # attn c_proj: weight (C, C) -> x @ W form -> split rows per head
        wo.append(normal((C, C), proj_std).T.reshape(H, hd, C))
        wfc.append(normal((Hid, C), std).T)       # (C, Hid)
        wp2.append(normal((C, Hid), proj_std).T)  # (Hid, C)

    b_qkv = jnp.zeros((L, 1, 3 * C), jnp.float32)
    b_qkv = b_qkv.at[:, :, :C].multiply(scale)    # Q bias gets the scale too

    def stack_bf16(lst):
        return jnp.stack(lst).astype(jnp.bfloat16)

    return {
        'wte': wte.astype(jnp.bfloat16),
        'wpe': wpe,                                   # f32
        'ln1_w': jnp.ones((L, 1, C), jnp.float32),
        'ln1_b': jnp.zeros((L, 1, C), jnp.float32),
        'w_qkv': stack_bf16(wqkv),
        'b_qkv': b_qkv,
        'w_attnproj': stack_bf16(wo),                 # (L, H, hd, C)
        'b_attnproj': jnp.zeros((L, 1, C), jnp.float32),
        'ln2_w': jnp.ones((L, 1, C), jnp.float32),
        'ln2_b': jnp.zeros((L, 1, C), jnp.float32),
        'w_fc': stack_bf16(wfc),
        'b_fc': jnp.zeros((L, 1, Hid), jnp.float32),
        'w_mlpproj': stack_bf16(wp2),
        'b_mlpproj': jnp.zeros((L, 1, C), jnp.float32),
        'lnf_w': jnp.ones((1, C), jnp.float32),
        'lnf_b': jnp.zeros((1, C), jnp.float32),
        'w_lm': w_lm.astype(jnp.bfloat16),
    }


# ---------------------------------- main -------------------------------------
if __name__ == "__main__":
    key = jax.random.PRNGKey(0)
    pkey, ikey = jax.random.split(key)
    params = init_params(pkey)

    B, T = 2, 8
    idx = jax.random.randint(ikey, (B, T), 0, VOCAB_SIZE, dtype=jnp.int32)

    # grid_steps=1: whole batch fused into one grid step (v5e/v6e optimal).
    # On v7x pass grid_steps=2 to occupy both TensorCores.
    logits = gpt_forward(idx, params)
    jax.block_until_ready(logits)
    assert logits.shape == (B, T, VOCAB_SIZE)
    assert bool(jnp.all(jnp.isfinite(logits)))
    print("KERNEL_OK")
</pallas_src>

<mosaic_0001>
module attributes {stable_mosaic.version = 11 : i64} {
  func.func @gpt_kernel(%arg0: i32, %arg1: memref<16x1xi32, #tpu.memory_space<vmem>>, %arg2: memref<16x16xf32, #tpu.memory_space<vmem>>, %arg3: memref<64x32xbf16, #tpu.memory_space<vmem>>, %arg4: memref<16x32xf32, #tpu.memory_space<vmem>>, %arg5: memref<2x1x32xf32, #tpu.memory_space<vmem>>, %arg6: memref<2x1x32xf32, #tpu.memory_space<vmem>>, %arg7: memref<2x32x96xbf16, #tpu.memory_space<vmem>>, %arg8: memref<2x1x96xf32, #tpu.memory_space<vmem>>, %arg9: memref<2x4x8x32xbf16, #tpu.memory_space<vmem>>, %arg10: memref<2x1x32xf32, #tpu.memory_space<vmem>>, %arg11: memref<2x1x32xf32, #tpu.memory_space<vmem>>, %arg12: memref<2x1x32xf32, #tpu.memory_space<vmem>>, %arg13: memref<2x32x128xbf16, #tpu.memory_space<vmem>>, %arg14: memref<2x1x128xf32, #tpu.memory_space<vmem>>, %arg15: memref<2x128x32xbf16, #tpu.memory_space<vmem>>, %arg16: memref<2x1x32xf32, #tpu.memory_space<vmem>>, %arg17: memref<1x32xf32, #tpu.memory_space<vmem>>, %arg18: memref<1x32xf32, #tpu.memory_space<vmem>>, %arg19: memref<32x128xbf16, #tpu.memory_space<vmem>>, %arg20: memref<16x128xf32, #tpu.memory_space<vmem>>) attributes {dimension_semantics = [#tpu.dimension_semantics<parallel>], iteration_bounds = array<i64: 1>, scalar_prefetch = 0 : i64, scratch_operands = 0 : i64, tpu.core_type = #tpu.core_type<tc>, window_params = [{transform_indices = @transform_0, window_bounds = array<i64: 16, 1>}, {pipeline_mode = #tpu.pipeline_mode<synchronous>, transform_indices = @transform_1, window_bounds = array<i64: 16, 16>}, {pipeline_mode = #tpu.pipeline_mode<synchronous>, transform_indices = @transform_2, window_bounds = array<i64: 64, 32>}, {transform_indices = @transform_3, window_bounds = array<i64: 16, 32>}, {pipeline_mode = #tpu.pipeline_mode<synchronous>, transform_indices = @transform_4, window_bounds = array<i64: 2, 1, 32>}, {pipeline_mode = #tpu.pipeline_mode<synchronous>, transform_indices = @transform_5, window_bounds = array<i64: 2, 1, 32>}, {pipeline_mode = #tpu.pipeline_mode<synchronous>, transform_indices = @transform_6, window_bounds = array<i64: 2, 32, 96>}, {pipeline_mode = #tpu.pipeline_mode<synchronous>, transform_indices = @transform_7, window_bounds = array<i64: 2, 1, 96>}, {pipeline_mode = #tpu.pipeline_mode<synchronous>, transform_indices = @transform_8, window_bounds = array<i64: 2, 4, 8, 32>}, {pipeline_mode = #tpu.pipeline_mode<synchronous>, transform_indices = @transform_9, window_bounds = array<i64: 2, 1, 32>}, {pipeline_mode = #tpu.pipeline_mode<synchronous>, transform_indices = @transform_10, window_bounds = array<i64: 2, 1, 32>}, {pipeline_mode = #tpu.pipeline_mode<synchronous>, transform_indices = @transform_11, window_bounds = array<i64: 2, 1, 32>}, {pipeline_mode = #tpu.pipeline_mode<synchronous>, transform_indices = @transform_12, window_bounds = array<i64: 2, 32, 128>}, {pipeline_mode = #tpu.pipeline_mode<synchronous>, transform_indices = @transform_13, window_bounds = array<i64: 2, 1, 128>}, {pipeline_mode = #tpu.pipeline_mode<synchronous>, transform_indices = @transform_14, window_bounds = array<i64: 2, 128, 32>}, {pipeline_mode = #tpu.pipeline_mode<synchronous>, transform_indices = @transform_15, window_bounds = array<i64: 2, 1, 32>}, {pipeline_mode = #tpu.pipeline_mode<synchronous>, transform_indices = @transform_16, window_bounds = array<i64: 1, 32>}, {pipeline_mode = #tpu.pipeline_mode<synchronous>, transform_indices = @transform_17, window_bounds = array<i64: 1, 32>}, {pipeline_mode = #tpu.pipeline_mode<synchronous>, transform_indices = @transform_18, window_bounds = array<i64: 32, 128>}, {transform_indices = @transform_19, window_bounds = array<i64: 16, 128>}]} {
    %c0 = arith.constant 0 : index
    %c0_0 = arith.constant 0 : index
    %0 = vector.load %arg1[%c0, %c0_0] : memref<16x1xi32, #tpu.memory_space<vmem>>, vector<16x1xi32>
    %1 = tpu.iota {dimensions = array<i32: 1>} : vector<16x64xi32>
    %2 = vector.broadcast %0 : vector<16x1xi32> to vector<16x64xi32>
    %3 = arith.cmpi eq, %1, %2 : vector<16x64xi32>
    %cst = arith.constant 1.000000e+00 : f32
    %cst_1 = arith.constant 0.000000e+00 : f32
    %4 = vector.broadcast %cst : f32 to vector<16x64xf32>
    %5 = vector.broadcast %cst_1 : f32 to vector<16x64xf32>
    %6 = arith.select %3, %4, %5 : vector<16x64xi1>, vector<16x64xf32>
    %7 = arith.truncf %6 : vector<16x64xf32> to vector<16x64xbf16>
    %c0_2 = arith.constant 0 : index
    %c0_3 = arith.constant 0 : index
    %8 = vector.load %arg3[%c0_2, %c0_3] : memref<64x32xbf16, #tpu.memory_space<vmem>>, vector<64x32xbf16>
    %cst_4 = arith.constant dense<0.000000e+00> : vector<16x32xf32>
    %9 = tpu.matmul %7, %8, %cst_4 {dimension_numbers = #tpu.dot_dimension_numbers<[1], [0], [0], [1], [0, 0, 1, 1], [], []>} : vector<16x64xbf16>, vector<64x32xbf16>, vector<16x32xf32> -> vector<16x32xf32>
    %c0_5 = arith.constant 0 : index
    %c0_6 = arith.constant 0 : index
    %10 = vector.load %arg4[%c0_5, %c0_6] : memref<16x32xf32, #tpu.memory_space<vmem>>, vector<16x32xf32>
    %11 = arith.addf %9, %10 : vector<16x32xf32>
    %c0_7 = arith.constant 0 : index
    %c0_8 = arith.constant 0 : index
    %12 = vector.load %arg2[%c0_7, %c0_8] : memref<16x16xf32, #tpu.memory_space<vmem>>, vector<16x16xf32>
    %c0_9 = arith.constant 0 : index
    %c0_10 = arith.constant 0 : index
    %c0_11 = arith.constant 0 : index
    %13 = vector.load %arg5[%c0_9, %c0_10, %c0_11] : memref<2x1x32xf32, #tpu.memory_space<vmem>>, vector<1x1x32xf32>
    %14 = vector.shape_cast %13 : vector<1x1x32xf32> to vector<1x32xf32>
    %c0_12 = arith.constant 0 : index
    %c0_13 = arith.constant 0 : index
    %c0_14 = arith.constant 0 : index
    %15 = vector.load %arg6[%c0_12, %c0_13, %c0_14] : memref<2x1x32xf32, #tpu.memory_space<vmem>>, vector<1x1x32xf32>
    %16 = vector.shape_cast %15 : vector<1x1x32xf32> to vector<1x32xf32>
    %cst_15 = arith.constant dense<0.000000e+00> : vector<16xf32>
    %17 = vector.multi_reduction <add>, %11, %cst_15 [1] : vector<16x32xf32> to vector<16xf32>
    %18 = vector.shape_cast %17 : vector<16xf32> to vector<16x1xf32>
    %cst_16 = arith.constant 3.200000e+01 : f32
    %19 = vector.broadcast %cst_16 : f32 to vector<16x1xf32>
    %20 = arith.divf %18, %19 : vector<16x1xf32>
    %21 = vector.broadcast %20 : vector<16x1xf32> to vector<16x32xf32>
    %22 = arith.subf %11, %21 : vector<16x32xf32>
    %23 = arith.mulf %22, %22 : vector<16x32xf32>
    %cst_17 = arith.constant dense<0.000000e+00> : vector<16xf32>
    %24 = vector.multi_reduction <add>, %23, %cst_17 [1] : vector<16x32xf32> to vector<16xf32>
    %25 = vector.shape_cast %24 : vector<16xf32> to vector<16x1xf32>
    %cst_18 = arith.constant 3.200000e+01 : f32
    %26 = vector.broadcast %cst_18 : f32 to vector<16x1xf32>
    %27 = arith.divf %25, %26 : vector<16x1xf32>
    %28 = vector.broadcast %20 : vector<16x1xf32> to vector<16x32xf32>
    %29 = arith.subf %11, %28 : vector<16x32xf32>
    %cst_19 = arith.constant 9.99999974E-6 : f32
    %30 = vector.broadcast %cst_19 : f32 to vector<16x1xf32>
    %31 = arith.addf %27, %30 : vector<16x1xf32>
    %32 = math.rsqrt %31 : vector<16x1xf32>
    %33 = vector.broadcast %32 : vector<16x1xf32> to vector<16x32xf32>
    %34 = arith.mulf %29, %33 : vector<16x32xf32>
    %35 = vector.broadcast %14 : vector<1x32xf32> to vector<16x32xf32>
    %36 = arith.mulf %34, %35 : vector<16x32xf32>
    %37 = vector.broadcast %16 : vector<1x32xf32> to vector<16x32xf32>
    %38 = arith.addf %36, %37 : vector<16x32xf32>
    %39 = arith.truncf %38 : vector<16x32xf32> to vector<16x32xbf16>
    %c0_20 = arith.constant 0 : index
    %c0_21 = arith.constant 0 : index
    %c0_22 = arith.constant 0 : index
    %40 = vector.load %arg7[%c0_20, %c0_21, %c0_22] : memref<2x32x96xbf16, #tpu.memory_space<vmem>>, vector<1x32x96xbf16>
    %41 = vector.shape_cast %40 : vector<1x32x96xbf16> to vector<32x96xbf16>
    %cst_23 = arith.constant dense<0.000000e+00> : vector<16x96xf32>
    %42 = tpu.matmul %39, %41, %cst_23 {dimension_numbers = #tpu.dot_dimension_numbers<[1], [0], [0], [1], [0, 0, 1, 1], [], []>} : vector<16x32xbf16>, vector<32x96xbf16>, vector<16x96xf32> -> vector<16x96xf32>
    %c0_24 = arith.constant 0 : index
    %c0_25 = arith.constant 0 : index
    %c0_26 = arith.constant 0 : index
    %43 = vector.load %arg8[%c0_24, %c0_25, %c0_26] : memref<2x1x96xf32, #tpu.memory_space<vmem>>, vector<1x1x96xf32>
    %44 = vector.shape_cast %43 : vector<1x1x96xf32> to vector<1x96xf32>
    %45 = vector.broadcast %44 : vector<1x96xf32> to vector<16x96xf32>
    %46 = arith.addf %42, %45 : vector<16x96xf32>
    %47 = arith.truncf %46 : vector<16x96xf32> to vector<16x96xbf16>
    %c0_27 = arith.constant 0 : index
    %c0_28 = arith.constant 0 : index
    %c0_29 = arith.constant 0 : index
    %c0_30 = arith.constant 0 : index
    %48 = vector.load %arg9[%c0_27, %c0_28, %c0_29, %c0_30] : memref<2x4x8x32xbf16, #tpu.memory_space<vmem>>, vector<1x4x8x32xbf16>
    %49 = vector.shape_cast %48 : vector<1x4x8x32xbf16> to vector<4x8x32xbf16>
    %cst_31 = arith.constant 0.000000e+00 : f32
    %50 = vector.broadcast %cst_31 : f32 to vector<16x32xf32>
    %51 = vector.extract_strided_slice %47 {offsets = [0, 0], sizes = [16, 8], strides = [1, 1]} : vector<16x96xbf16> to vector<16x8xbf16>
    %52 = vector.extract_strided_slice %47 {offsets = [0, 32], sizes = [16, 8], strides = [1, 1]} : vector<16x96xbf16> to vector<16x8xbf16>
    %53 = vector.extract_strided_slice %47 {offsets = [0, 64], sizes = [16, 8], strides = [1, 1]} : vector<16x96xbf16> to vector<16x8xbf16>
    %cst_32 = arith.constant dense<0.000000e+00> : vector<16x16xf32>
    %54 = tpu.matmul %51, %52, %cst_32 {dimension_numbers = #tpu.dot_dimension_numbers<[1], [1], [0], [0], [0, 0, 1, 0], [], []>} : vector<16x8xbf16>, vector<16x8xbf16>, vector<16x16xf32> -> vector<16x16xf32>
    %55 = arith.addf %54, %12 : vector<16x16xf32>
    %cst_33 = arith.constant dense<0xFF800000> : vector<16xf32>
    %56 = vector.multi_reduction <maximumf>, %55, %cst_33 [1] : vector<16x16xf32> to vector<16xf32>
    %57 = vector.shape_cast %56 : vector<16xf32> to vector<16x1xf32>
    %58 = vector.broadcast %57 : vector<16x1xf32> to vector<16x16xf32>
    %59 = arith.subf %55, %58 : vector<16x16xf32>
    %60 = math.exp %59 : vector<16x16xf32>
    %cst_34 = arith.constant dense<0.000000e+00> : vector<16xf32>
    %61 = vector.multi_reduction <add>, %60, %cst_34 [1] : vector<16x16xf32> to vector<16xf32>
    %62 = vector.shape_cast %61 : vector<16xf32> to vector<16x1xf32>
    %63 = tpu.reciprocal %62 {approx = true} : vector<16x1xf32> -> vector<16x1xf32>
    %64 = vector.broadcast %63 : vector<16x1xf32> to vector<16x16xf32>
    %65 = arith.mulf %60, %64 : vector<16x16xf32>
    %66 = arith.truncf %65 : vector<16x16xf32> to vector<16x16xbf16>
    %cst_35 = arith.constant dense<0.000000e+00> : vector<16x8xf32>
    %67 = tpu.matmul %66, %53, %cst_35 {dimension_numbers = #tpu.dot_dimension_numbers<[1], [0], [0], [1], [0, 0, 1, 1], [], []>} : vector<16x16xbf16>, vector<16x8xbf16>, vector<16x8xf32> -> vector<16x8xf32>
    %68 = arith.truncf %67 : vector<16x8xf32> to vector<16x8xbf16>
    %69 = vector.extract_strided_slice %49 {offsets = [0, 0, 0], sizes = [1, 8, 32], strides = [1, 1, 1]} : vector<4x8x32xbf16> to vector<1x8x32xbf16>
    %70 = vector.shape_cast %69 : vector<1x8x32xbf16> to vector<8x32xbf16>
    %cst_36 = arith.constant dense<0.000000e+00> : vector<16x32xf32>
    %71 = tpu.matmul %68, %70, %cst_36 {dimension_numbers = #tpu.dot_dimension_numbers<[1], [0], [0], [1], [0, 0, 1, 1], [], []>} : vector<16x8xbf16>, vector<8x32xbf16>, vector<16x32xf32> -> vector<16x32xf32>
    %72 = arith.addf %50, %71 : vector<16x32xf32>
    %73 = vector.extract_strided_slice %47 {offsets = [0, 8], sizes = [16, 8], strides = [1, 1]} : vector<16x96xbf16> to vector<16x8xbf16>
    %74 = vector.extract_strided_slice %47 {offsets = [0, 40], sizes = [16, 8], strides = [1, 1]} : vector<16x96xbf16> to vector<16x8xbf16>
    %75 = vector.extract_strided_slice %47 {offsets = [0, 72], sizes = [16, 8], strides = [1, 1]} : vector<16x96xbf16> to vector<16x8xbf16>
    %cst_37 = arith.constant dense<0.000000e+00> : vector<16x16xf32>
    %76 = tpu.matmul %73, %74, %cst_37 {dimension_numbers = #tpu.dot_dimension_numbers<[1], [1], [0], [0], [0, 0, 1, 0], [], []>} : vector<16x8xbf16>, vector<16x8xbf16>, vector<16x16xf32> -> vector<16x16xf32>
    %77 = arith.addf %76, %12 : vector<16x16xf32>
    %cst_38 = arith.constant dense<0xFF800000> : vector<16xf32>
    %78 = vector.multi_reduction <maximumf>, %77, %cst_38 [1] : vector<16x16xf32> to vector<16xf32>
    %79 = vector.shape_cast %78 : vector<16xf32> to vector<16x1xf32>
    %80 = vector.broadcast %79 : vector<16x1xf32> to vector<16x16xf32>
    %81 = arith.subf %77, %80 : vector<16x16xf32>
    %82 = math.exp %81 : vector<16x16xf32>
    %cst_39 = arith.constant dense<0.000000e+00> : vector<16xf32>
    %83 = vector.multi_reduction <add>, %82, %cst_39 [1] : vector<16x16xf32> to vector<16xf32>
    %84 = vector.shape_cast %83 : vector<16xf32> to vector<16x1xf32>
    %85 = tpu.reciprocal %84 {approx = true} : vector<16x1xf32> -> vector<16x1xf32>
    %86 = vector.broadcast %85 : vector<16x1xf32> to vector<16x16xf32>
    %87 = arith.mulf %82, %86 : vector<16x16xf32>
    %88 = arith.truncf %87 : vector<16x16xf32> to vector<16x16xbf16>
    %cst_40 = arith.constant dense<0.000000e+00> : vector<16x8xf32>
    %89 = tpu.matmul %88, %75, %cst_40 {dimension_numbers = #tpu.dot_dimension_numbers<[1], [0], [0], [1], [0, 0, 1, 1], [], []>} : vector<16x16xbf16>, vector<16x8xbf16>, vector<16x8xf32> -> vector<16x8xf32>
    %90 = arith.truncf %89 : vector<16x8xf32> to vector<16x8xbf16>
    %91 = vector.extract_strided_slice %49 {offsets = [1, 0, 0], sizes = [1, 8, 32], strides = [1, 1, 1]} : vector<4x8x32xbf16> to vector<1x8x32xbf16>
    %92 = vector.shape_cast %91 : vector<1x8x32xbf16> to vector<8x32xbf16>
    %cst_41 = arith.constant dense<0.000000e+00> : vector<16x32xf32>
    %93 = tpu.matmul %90, %92, %cst_41 {dimension_numbers = #tpu.dot_dimension_numbers<[1], [0], [0], [1], [0, 0, 1, 1], [], []>} : vector<16x8xbf16>, vector<8x32xbf16>, vector<16x32xf32> -> vector<16x32xf32>
    %94 = arith.addf %72, %93 : vector<16x32xf32>
    %95 = vector.extract_strided_slice %47 {offsets = [0, 16], sizes = [16, 8], strides = [1, 1]} : vector<16x96xbf16> to vector<16x8xbf16>
    %96 = vector.extract_strided_slice %47 {offsets = [0, 48], sizes = [16, 8], strides = [1, 1]} : vector<16x96xbf16> to vector<16x8xbf16>
    %97 = vector.extract_strided_slice %47 {offsets = [0, 80], sizes = [16, 8], strides = [1, 1]} : vector<16x96xbf16> to vector<16x8xbf16>
    %cst_42 = arith.constant dense<0.000000e+00> : vector<16x16xf32>
    %98 = tpu.matmul %95, %96, %cst_42 {dimension_numbers = #tpu.dot_dimension_numbers<[1], [1], [0], [0], [0, 0, 1, 0], [], []>} : vector<16x8xbf16>, vector<16x8xbf16>, vector<16x16xf32> -> vector<16x16xf32>
    %99 = arith.addf %98, %12 : vector<16x16xf32>
    %cst_43 = arith.constant dense<0xFF800000> : vector<16xf32>
    %100 = vector.multi_reduction <maximumf>, %99, %cst_43 [1] : vector<16x16xf32> to vector<16xf32>
    %101 = vector.shape_cast %100 : vector<16xf32> to vector<16x1xf32>
    %102 = vector.broadcast %101 : vector<16x1xf32> to vector<16x16xf32>
    %103 = arith.subf %99, %102 : vector<16x16xf32>
    %104 = math.exp %103 : vector<16x16xf32>
    %cst_44 = arith.constant dense<0.000000e+00> : vector<16xf32>
    %105 = vector.multi_reduction <add>, %104, %cst_44 [1] : vector<16x16xf32> to vector<16xf32>
    %106 = vector.shape_cast %105 : vector<16xf32> to vector<16x1xf32>
    %107 = tpu.reciprocal %106 {approx = true} : vector<16x1xf32> -> vector<16x1xf32>
    %108 = vector.broadcast %107 : vector<16x1xf32> to vector<16x16xf32>
    %109 = arith.mulf %104, %108 : vector<16x16xf32>
    %110 = arith.truncf %109 : vector<16x16xf32> to vector<16x16xbf16>
    %cst_45 = arith.constant dense<0.000000e+00> : vector<16x8xf32>
    %111 = tpu.matmul %110, %97, %cst_45 {dimension_numbers = #tpu.dot_dimension_numbers<[1], [0], [0], [1], [0, 0, 1, 1], [], []>} : vector<16x16xbf16>, vector<16x8xbf16>, vector<16x8xf32> -> vector<16x8xf32>
    %112 = arith.truncf %111 : vector<16x8xf32> to vector<16x8xbf16>
    %113 = vector.extract_strided_slice %49 {offsets = [2, 0, 0], sizes = [1, 8, 32], strides = [1, 1, 1]} : vector<4x8x32xbf16> to vector<1x8x32xbf16>
    %114 = vector.shape_cast %113 : vector<1x8x32xbf16> to vector<8x32xbf16>
    %cst_46 = arith.constant dense<0.000000e+00> : vector<16x32xf32>
    %115 = tpu.matmul %112, %114, %cst_46 {dimension_numbers = #tpu.dot_dimension_numbers<[1], [0], [0], [1], [0, 0, 1, 1], [], []>} : vector<16x8xbf16>, vector<8x32xbf16>, vector<16x32xf32> -> vector<16x32xf32>
    %116 = arith.addf %94, %115 : vector<16x32xf32>
    %117 = vector.extract_strided_slice %47 {offsets = [0, 24], sizes = [16, 8], strides = [1, 1]} : vector<16x96xbf16> to vector<16x8xbf16>
    %118 = vector.extract_strided_slice %47 {offsets = [0, 56], sizes = [16, 8], strides = [1, 1]} : vector<16x96xbf16> to vector<16x8xbf16>
    %119 = vector.extract_strided_slice %47 {offsets = [0, 88], sizes = [16, 8], strides = [1, 1]} : vector<16x96xbf16> to vector<16x8xbf16>
    %cst_47 = arith.constant dense<0.000000e+00> : vector<16x16xf32>
    %120 = tpu.matmul %117, %118, %cst_47 {dimension_numbers = #tpu.dot_dimension_numbers<[1], [1], [0], [0], [0, 0, 1, 0], [], []>} : vector<16x8xbf16>, vector<16x8xbf16>, vector<16x16xf32> -> vector<16x16xf32>
    %121 = arith.addf %120, %12 : vector<16x16xf32>
    %cst_48 = arith.constant dense<0xFF800000> : vector<16xf32>
    %122 = vector.multi_reduction <maximumf>, %121, %cst_48 [1] : vector<16x16xf32> to vector<16xf32>
    %123 = vector.shape_cast %122 : vector<16xf32> to vector<16x1xf32>
    %124 = vector.broadcast %123 : vector<16x1xf32> to vector<16x16xf32>
    %125 = arith.subf %121, %124 : vector<16x16xf32>
    %126 = math.exp %125 : vector<16x16xf32>
    %cst_49 = arith.constant dense<0.000000e+00> : vector<16xf32>
    %127 = vector.multi_reduction <add>, %126, %cst_49 [1] : vector<16x16xf32> to vector<16xf32>
    %128 = vector.shape_cast %127 : vector<16xf32> to vector<16x1xf32>
    %129 = tpu.reciprocal %128 {approx = true} : vector<16x1xf32> -> vector<16x1xf32>
    %130 = vector.broadcast %129 : vector<16x1xf32> to vector<16x16xf32>
    %131 = arith.mulf %126, %130 : vector<16x16xf32>
    %132 = arith.truncf %131 : vector<16x16xf32> to vector<16x16xbf16>
    %cst_50 = arith.constant dense<0.000000e+00> : vector<16x8xf32>
    %133 = tpu.matmul %132, %119, %cst_50 {dimension_numbers = #tpu.dot_dimension_numbers<[1], [0], [0], [1], [0, 0, 1, 1], [], []>} : vector<16x16xbf16>, vector<16x8xbf16>, vector<16x8xf32> -> vector<16x8xf32>
    %134 = arith.truncf %133 : vector<16x8xf32> to vector<16x8xbf16>
    %135 = vector.extract_strided_slice %49 {offsets = [3, 0, 0], sizes = [1, 8, 32], strides = [1, 1, 1]} : vector<4x8x32xbf16> to vector<1x8x32xbf16>
    %136 = vector.shape_cast %135 : vector<1x8x32xbf16> to vector<8x32xbf16>
    %cst_51 = arith.constant dense<0.000000e+00> : vector<16x32xf32>
    %137 = tpu.matmul %134, %136, %cst_51 {dimension_numbers = #tpu.dot_dimension_numbers<[1], [0], [0], [1], [0, 0, 1, 1], [], []>} : vector<16x8xbf16>, vector<8x32xbf16>, vector<16x32xf32> -> vector<16x32xf32>
    %138 = arith.addf %116, %137 : vector<16x32xf32>
    %139 = arith.addf %11, %138 : vector<16x32xf32>
    %c0_52 = arith.constant 0 : index
    %c0_53 = arith.constant 0 : index
    %c0_54 = arith.constant 0 : index
    %140 = vector.load %arg10[%c0_52, %c0_53, %c0_54] : memref<2x1x32xf32, #tpu.memory_space<vmem>>, vector<1x1x32xf32>
    %141 = vector.shape_cast %140 : vector<1x1x32xf32> to vector<1x32xf32>
    %142 = vector.broadcast %141 : vector<1x32xf32> to vector<16x32xf32>
    %143 = arith.addf %139, %142 : vector<16x32xf32>
    %c0_55 = arith.constant 0 : index
    %c0_56 = arith.constant 0 : index
    %c0_57 = arith.constant 0 : index
    %144 = vector.load %arg11[%c0_55, %c0_56, %c0_57] : memref<2x1x32xf32, #tpu.memory_space<vmem>>, vector<1x1x32xf32>
    %145 = vector.shape_cast %144 : vector<1x1x32xf32> to vector<1x32xf32>
    %c0_58 = arith.constant 0 : index
    %c0_59 = arith.constant 0 : index
    %c0_60 = arith.constant 0 : index
    %146 = vector.load %arg12[%c0_58, %c0_59, %c0_60] : memref<2x1x32xf32, #tpu.memory_space<vmem>>, vector<1x1x32xf32>
    %147 = vector.shape_cast %146 : vector<1x1x32xf32> to vector<1x32xf32>
    %cst_61 = arith.constant dense<0.000000e+00> : vector<16xf32>
    %148 = vector.multi_reduction <add>, %143, %cst_61 [1] : vector<16x32xf32> to vector<16xf32>
    %149 = vector.shape_cast %148 : vector<16xf32> to vector<16x1xf32>
    %cst_62 = arith.constant 3.200000e+01 : f32
    %150 = vector.broadcast %cst_62 : f32 to vector<16x1xf32>
    %151 = arith.divf %149, %150 : vector<16x1xf32>
    %152 = vector.broadcast %151 : vector<16x1xf32> to vector<16x32xf32>
    %153 = arith.subf %143, %152 : vector<16x32xf32>
    %154 = arith.mulf %153, %153 : vector<16x32xf32>
    %cst_63 = arith.constant dense<0.000000e+00> : vector<16xf32>
    %155 = vector.multi_reduction <add>, %154, %cst_63 [1] : vector<16x32xf32> to vector<16xf32>
    %156 = vector.shape_cast %155 : vector<16xf32> to vector<16x1xf32>
    %cst_64 = arith.constant 3.200000e+01 : f32
    %157 = vector.broadcast %cst_64 : f32 to vector<16x1xf32>
    %158 = arith.divf %156, %157 : vector<16x1xf32>
    %159 = vector.broadcast %151 : vector<16x1xf32> to vector<16x32xf32>
    %160 = arith.subf %143, %159 : vector<16x32xf32>
    %cst_65 = arith.constant 9.99999974E-6 : f32
    %161 = vector.broadcast %cst_65 : f32 to vector<16x1xf32>
    %162 = arith.addf %158, %161 : vector<16x1xf32>
    %163 = math.rsqrt %162 : vector<16x1xf32>
    %164 = vector.broadcast %163 : vector<16x1xf32> to vector<16x32xf32>
    %165 = arith.mulf %160, %164 : vector<16x32xf32>
    %166 = vector.broadcast %145 : vector<1x32xf32> to vector<16x32xf32>
    %167 = arith.mulf %165, %166 : vector<16x32xf32>
    %168 = vector.broadcast %147 : vector<1x32xf32> to vector<16x32xf32>
    %169 = arith.addf %167, %168 : vector<16x32xf32>
    %170 = arith.truncf %169 : vector<16x32xf32> to vector<16x32xbf16>
    %c0_66 = arith.constant 0 : index
    %c0_67 = arith.constant 0 : index
    %c0_68 = arith.constant 0 : index
    %171 = vector.load %arg13[%c0_66, %c0_67, %c0_68] : memref<2x32x128xbf16, #tpu.memory_space<vmem>>, vector<1x32x128xbf16>
    %172 = vector.shape_cast %171 : vector<1x32x128xbf16> to vector<32x128xbf16>
    %cst_69 = arith.constant dense<0.000000e+00> : vector<16x128xf32>
    %173 = tpu.matmul %170, %172, %cst_69 {dimension_numbers = #tpu.dot_dimension_numbers<[1], [0], [0], [1], [0, 0, 1, 1], [], []>} : vector<16x32xbf16>, vector<32x128xbf16>, vector<16x128xf32> -> vector<16x128xf32>
    %c0_70 = arith.constant 0 : index
    %c0_71 = arith.constant 0 : index
    %c0_72 = arith.constant 0 : index
    %174 = vector.load %arg14[%c0_70, %c0_71, %c0_72] : memref<2x1x128xf32, #tpu.memory_space<vmem>>, vector<1x1x128xf32>
    %175 = vector.shape_cast %174 : vector<1x1x128xf32> to vector<1x128xf32>
    %176 = vector.broadcast %175 : vector<1x128xf32> to vector<16x128xf32>
    %177 = arith.addf %173, %176 : vector<16x128xf32>
    %cst_73 = arith.constant 5.000000e-01 : f32
    %178 = vector.broadcast %cst_73 : f32 to vector<16x128xf32>
    %179 = arith.mulf %178, %177 : vector<16x128xf32>
    %cst_74 = arith.constant 4.471500e-02 : f32
    %180 = vector.broadcast %cst_74 : f32 to vector<16x128xf32>
    %181 = arith.mulf %180, %177 : vector<16x128xf32>
    %182 = arith.mulf %181, %177 : vector<16x128xf32>
    %183 = arith.mulf %182, %177 : vector<16x128xf32>
    %184 = arith.addf %177, %183 : vector<16x128xf32>
    %cst_75 = arith.constant 0.797884583 : f32
    %185 = vector.broadcast %cst_75 : f32 to vector<16x128xf32>
    %186 = arith.mulf %185, %184 : vector<16x128xf32>
    %187 = math.tanh %186 : vector<16x128xf32>
    %cst_76 = arith.constant 1.000000e+00 : f32
    %188 = vector.broadcast %cst_76 : f32 to vector<16x128xf32>
    %189 = arith.addf %188, %187 : vector<16x128xf32>
    %190 = arith.mulf %179, %189 : vector<16x128xf32>
    %191 = arith.truncf %190 : vector<16x128xf32> to vector<16x128xbf16>
    %c0_77 = arith.constant 0 : index
    %c0_78 = arith.constant 0 : index
    %c0_79 = arith.constant 0 : index
    %192 = vector.load %arg15[%c0_77, %c0_78, %c0_79] : memref<2x128x32xbf16, #tpu.memory_space<vmem>>, vector<1x128x32xbf16>
    %193 = vector.shape_cast %192 : vector<1x128x32xbf16> to vector<128x32xbf16>
    %cst_80 = arith.constant dense<0.000000e+00> : vector<16x32xf32>
    %194 = tpu.matmul %191, %193, %cst_80 {dimension_numbers = #tpu.dot_dimension_numbers<[1], [0], [0], [1], [0, 0, 1, 1], [], []>} : vector<16x128xbf16>, vector<128x32xbf16>, vector<16x32xf32> -> vector<16x32xf32>
    %c0_81 = arith.constant 0 : index
    %c0_82 = arith.constant 0 : index
    %c0_83 = arith.constant 0 : index
    %195 = vector.load %arg16[%c0_81, %c0_82, %c0_83] : memref<2x1x32xf32, #tpu.memory_space<vmem>>, vector<1x1x32xf32>
    %196 = vector.shape_cast %195 : vector<1x1x32xf32> to vector<1x32xf32>
    %197 = vector.broadcast %196 : vector<1x32xf32> to vector<16x32xf32>
    %198 = arith.addf %194, %197 : vector<16x32xf32>
    %199 = arith.addf %143, %198 : vector<16x32xf32>
    %c1 = arith.constant 1 : index
    %c0_84 = arith.constant 0 : index
    %c0_85 = arith.constant 0 : index
    %200 = vector.load %arg5[%c1, %c0_84, %c0_85] : memref<2x1x32xf32, #tpu.memory_space<vmem>>, vector<1x1x32xf32>
    %201 = vector.shape_cast %200 : vector<1x1x32xf32> to vector<1x32xf32>
    %c1_86 = arith.constant 1 : index
    %c0_87 = arith.constant 0 : index
    %c0_88 = arith.constant 0 : index
    %202 = vector.load %arg6[%c1_86, %c0_87, %c0_88] : memref<2x1x32xf32, #tpu.memory_space<vmem>>, vector<1x1x32xf32>
    %203 = vector.shape_cast %202 : vector<1x1x32xf32> to vector<1x32xf32>
    %cst_89 = arith.constant dense<0.000000e+00> : vector<16xf32>
    %204 = vector.multi_reduction <add>, %199, %cst_89 [1] : vector<16x32xf32> to vector<16xf32>
    %205 = vector.shape_cast %204 : vector<16xf32> to vector<16x1xf32>
    %cst_90 = arith.constant 3.200000e+01 : f32
    %206 = vector.broadcast %cst_90 : f32 to vector<16x1xf32>
    %207 = arith.divf %205, %206 : vector<16x1xf32>
    %208 = vector.broadcast %207 : vector<16x1xf32> to vector<16x32xf32>
    %209 = arith.subf %199, %208 : vector<16x32xf32>
    %210 = arith.mulf %209, %209 : vector<16x32xf32>
    %cst_91 = arith.constant dense<0.000000e+00> : vector<16xf32>
    %211 = vector.multi_reduction <add>, %210, %cst_91 [1] : vector<16x32xf32> to vector<16xf32>
    %212 = vector.shape_cast %211 : vector<16xf32> to vector<16x1xf32>
    %cst_92 = arith.constant 3.200000e+01 : f32
    %213 = vector.broadcast %cst_92 : f32 to vector<16x1xf32>
    %214 = arith.divf %212, %213 : vector<16x1xf32>
    %215 = vector.broadcast %207 : vector<16x1xf32> to vector<16x32xf32>
    %216 = arith.subf %199, %215 : vector<16x32xf32>
    %cst_93 = arith.constant 9.99999974E-6 : f32
    %217 = vector.broadcast %cst_93 : f32 to vector<16x1xf32>
    %218 = arith.addf %214, %217 : vector<16x1xf32>
    %219 = math.rsqrt %218 : vector<16x1xf32>
    %220 = vector.broadcast %219 : vector<16x1xf32> to vector<16x32xf32>
    %221 = arith.mulf %216, %220 : vector<16x32xf32>
    %222 = vector.broadcast %201 : vector<1x32xf32> to vector<16x32xf32>
    %223 = arith.mulf %221, %222 : vector<16x32xf32>
    %224 = vector.broadcast %203 : vector<1x32xf32> to vector<16x32xf32>
    %225 = arith.addf %223, %224 : vector<16x32xf32>
    %226 = arith.truncf %225 : vector<16x32xf32> to vector<16x32xbf16>
    %c1_94 = arith.constant 1 : index
    %c0_95 = arith.constant 0 : index
    %c0_96 = arith.constant 0 : index
    %227 = vector.load %arg7[%c1_94, %c0_95, %c0_96] : memref<2x32x96xbf16, #tpu.memory_space<vmem>>, vector<1x32x96xbf16>
    %228 = vector.shape_cast %227 : vector<1x32x96xbf16> to vector<32x96xbf16>
    %cst_97 = arith.constant dense<0.000000e+00> : vector<16x96xf32>
    %229 = tpu.matmul %226, %228, %cst_97 {dimension_numbers = #tpu.dot_dimension_numbers<[1], [0], [0], [1], [0, 0, 1, 1], [], []>} : vector<16x32xbf16>, vector<32x96xbf16>, vector<16x96xf32> -> vector<16x96xf32>
    %c1_98 = arith.constant 1 : index
    %c0_99 = arith.constant 0 : index
    %c0_100 = arith.constant 0 : index
    %230 = vector.load %arg8[%c1_98, %c0_99, %c0_100] : memref<2x1x96xf32, #tpu.memory_space<vmem>>, vector<1x1x96xf32>
    %231 = vector.shape_cast %230 : vector<1x1x96xf32> to vector<1x96xf32>
    %232 = vector.broadcast %231 : vector<1x96xf32> to vector<16x96xf32>
    %233 = arith.addf %229, %232 : vector<16x96xf32>
    %234 = arith.truncf %233 : vector<16x96xf32> to vector<16x96xbf16>
    %c1_101 = arith.constant 1 : index
    %c0_102 = arith.constant 0 : index
    %c0_103 = arith.constant 0 : index
    %c0_104 = arith.constant 0 : index
    %235 = vector.load %arg9[%c1_101, %c0_102, %c0_103, %c0_104] : memref<2x4x8x32xbf16, #tpu.memory_space<vmem>>, vector<1x4x8x32xbf16>
    %236 = vector.shape_cast %235 : vector<1x4x8x32xbf16> to vector<4x8x32xbf16>
    %cst_105 = arith.constant 0.000000e+00 : f32
    %237 = vector.broadcast %cst_105 : f32 to vector<16x32xf32>
    %238 = vector.extract_strided_slice %234 {offsets = [0, 0], sizes = [16, 8], strides = [1, 1]} : vector<16x96xbf16> to vector<16x8xbf16>
    %239 = vector.extract_strided_slice %234 {offsets = [0, 32], sizes = [16, 8], strides = [1, 1]} : vector<16x96xbf16> to vector<16x8xbf16>
    %240 = vector.extract_strided_slice %234 {offsets = [0, 64], sizes = [16, 8], strides = [1, 1]} : vector<16x96xbf16> to vector<16x8xbf16>
    %cst_106 = arith.constant dense<0.000000e+00> : vector<16x16xf32>
    %241 = tpu.matmul %238, %239, %cst_106 {dimension_numbers = #tpu.dot_dimension_numbers<[1], [1], [0], [0], [0, 0, 1, 0], [], []>} : vector<16x8xbf16>, vector<16x8xbf16>, vector<16x16xf32> -> vector<16x16xf32>
    %242 = arith.addf %241, %12 : vector<16x16xf32>
    %cst_107 = arith.constant dense<0xFF800000> : vector<16xf32>
    %243 = vector.multi_reduction <maximumf>, %242, %cst_107 [1] : vector<16x16xf32> to vector<16xf32>
    %244 = vector.shape_cast %243 : vector<16xf32> to vector<16x1xf32>
    %245 = vector.broadcast %244 : vector<16x1xf32> to vector<16x16xf32>
    %246 = arith.subf %242, %245 : vector<16x16xf32>
    %247 = math.exp %246 : vector<16x16xf32>
    %cst_108 = arith.constant dense<0.000000e+00> : vector<16xf32>
    %248 = vector.multi_reduction <add>, %247, %cst_108 [1] : vector<16x16xf32> to vector<16xf32>
    %249 = vector.shape_cast %248 : vector<16xf32> to vector<16x1xf32>
    %250 = tpu.reciprocal %249 {approx = true} : vector<16x1xf32> -> vector<16x1xf32>
    %251 = vector.broadcast %250 : vector<16x1xf32> to vector<16x16xf32>
    %252 = arith.mulf %247, %251 : vector<16x16xf32>
    %253 = arith.truncf %252 : vector<16x16xf32> to vector<16x16xbf16>
    %cst_109 = arith.constant dense<0.000000e+00> : vector<16x8xf32>
    %254 = tpu.matmul %253, %240, %cst_109 {dimension_numbers = #tpu.dot_dimension_numbers<[1], [0], [0], [1], [0, 0, 1, 1], [], []>} : vector<16x16xbf16>, vector<16x8xbf16>, vector<16x8xf32> -> vector<16x8xf32>
    %255 = arith.truncf %254 : vector<16x8xf32> to vector<16x8xbf16>
    %256 = vector.extract_strided_slice %236 {offsets = [0, 0, 0], sizes = [1, 8, 32], strides = [1, 1, 1]} : vector<4x8x32xbf16> to vector<1x8x32xbf16>
    %257 = vector.shape_cast %256 : vector<1x8x32xbf16> to vector<8x32xbf16>
    %cst_110 = arith.constant dense<0.000000e+00> : vector<16x32xf32>
    %258 = tpu.matmul %255, %257, %cst_110 {dimension_numbers = #tpu.dot_dimension_numbers<[1], [0], [0], [1], [0, 0, 1, 1], [], []>} : vector<16x8xbf16>, vector<8x32xbf16>, vector<16x32xf32> -> vector<16x32xf32>
    %259 = arith.addf %237, %258 : vector<16x32xf32>
    %260 = vector.extract_strided_slice %234 {offsets = [0, 8], sizes = [16, 8], strides = [1, 1]} : vector<16x96xbf16> to vector<16x8xbf16>
    %261 = vector.extract_strided_slice %234 {offsets = [0, 40], sizes = [16, 8], strides = [1, 1]} : vector<16x96xbf16> to vector<16x8xbf16>
    %262 = vector.extract_strided_slice %234 {offsets = [0, 72], sizes = [16, 8], strides = [1, 1]} : vector<16x96xbf16> to vector<16x8xbf16>
    %cst_111 = arith.constant dense<0.000000e+00> : vector<16x16xf32>
    %263 = tpu.matmul %260, %261, %cst_111 {dimension_numbers = #tpu.dot_dimension_numbers<[1], [1], [0], [0], [0, 0, 1, 0], [], []>} : vector<16x8xbf16>, vector<16x8xbf16>, vector<16x16xf32> -> vector<16x16xf32>
    %264 = arith.addf %263, %12 : vector<16x16xf32>
    %cst_112 = arith.constant dense<0xFF800000> : vector<16xf32>
    %265 = vector.multi_reduction <maximumf>, %264, %cst_112 [1] : vector<16x16xf32> to vector<16xf32>
    %266 = vector.shape_cast %265 : vector<16xf32> to vector<16x1xf32>
    %267 = vector.broadcast %266 : vector<16x1xf32> to vector<16x16xf32>
    %268 = arith.subf %264, %267 : vector<16x16xf32>
    %269 = math.exp %268 : vector<16x16xf32>
    %cst_113 = arith.constant dense<0.000000e+00> : vector<16xf32>
    %270 = vector.multi_reduction <add>, %269, %cst_113 [1] : vector<16x16xf32> to vector<16xf32>
    %271 = vector.shape_cast %270 : vector<16xf32> to vector<16x1xf32>
    %272 = tpu.reciprocal %271 {approx = true} : vector<16x1xf32> -> vector<16x1xf32>
    %273 = vector.broadcast %272 : vector<16x1xf32> to vector<16x16xf32>
    %274 = arith.mulf %269, %273 : vector<16x16xf32>
    %275 = arith.truncf %274 : vector<16x16xf32> to vector<16x16xbf16>
    %cst_114 = arith.constant dense<0.000000e+00> : vector<16x8xf32>
    %276 = tpu.matmul %275, %262, %cst_114 {dimension_numbers = #tpu.dot_dimension_numbers<[1], [0], [0], [1], [0, 0, 1, 1], [], []>} : vector<16x16xbf16>, vector<16x8xbf16>, vector<16x8xf32> -> vector<16x8xf32>
    %277 = arith.truncf %276 : vector<16x8xf32> to vector<16x8xbf16>
    %278 = vector.extract_strided_slice %236 {offsets = [1, 0, 0], sizes = [1, 8, 32], strides = [1, 1, 1]} : vector<4x8x32xbf16> to vector<1x8x32xbf16>
    %279 = vector.shape_cast %278 : vector<1x8x32xbf16> to vector<8x32xbf16>
    %cst_115 = arith.constant dense<0.000000e+00> : vector<16x32xf32>
    %280 = tpu.matmul %277, %279, %cst_115 {dimension_numbers = #tpu.dot_dimension_numbers<[1], [0], [0], [1], [0, 0, 1, 1], [], []>} : vector<16x8xbf16>, vector<8x32xbf16>, vector<16x32xf32> -> vector<16x32xf32>
    %281 = arith.addf %259, %280 : vector<16x32xf32>
    %282 = vector.extract_strided_slice %234 {offsets = [0, 16], sizes = [16, 8], strides = [1, 1]} : vector<16x96xbf16> to vector<16x8xbf16>
    %283 = vector.extract_strided_slice %234 {offsets = [0, 48], sizes = [16, 8], strides = [1, 1]} : vector<16x96xbf16> to vector<16x8xbf16>
    %284 = vector.extract_strided_slice %234 {offsets = [0, 80], sizes = [16, 8], strides = [1, 1]} : vector<16x96xbf16> to vector<16x8xbf16>
    %cst_116 = arith.constant dense<0.000000e+00> : vector<16x16xf32>
    %285 = tpu.matmul %282, %283, %cst_116 {dimension_numbers = #tpu.dot_dimension_numbers<[1], [1], [0], [0], [0, 0, 1, 0], [], []>} : vector<16x8xbf16>, vector<16x8xbf16>, vector<16x16xf32> -> vector<16x16xf32>
    %286 = arith.addf %285, %12 : vector<16x16xf32>
    %cst_117 = arith.constant dense<0xFF800000> : vector<16xf32>
    %287 = vector.multi_reduction <maximumf>, %286, %cst_117 [1] : vector<16x16xf32> to vector<16xf32>
    %288 = vector.shape_cast %287 : vector<16xf32> to vector<16x1xf32>
    %289 = vector.broadcast %288 : vector<16x1xf32> to vector<16x16xf32>
    %290 = arith.subf %286, %289 : vector<16x16xf32>
    %291 = math.exp %290 : vector<16x16xf32>
    %cst_118 = arith.constant dense<0.000000e+00> : vector<16xf32>
    %292 = vector.multi_reduction <add>, %291, %cst_118 [1] : vector<16x16xf32> to vector<16xf32>
    %293 = vector.shape_cast %292 : vector<16xf32> to vector<16x1xf32>
    %294 = tpu.reciprocal %293 {approx = true} : vector<16x1xf32> -> vector<16x1xf32>
    %295 = vector.broadcast %294 : vector<16x1xf32> to vector<16x16xf32>
    %296 = arith.mulf %291, %295 : vector<16x16xf32>
    %297 = arith.truncf %296 : vector<16x16xf32> to vector<16x16xbf16>
    %cst_119 = arith.constant dense<0.000000e+00> : vector<16x8xf32>
    %298 = tpu.matmul %297, %284, %cst_119 {dimension_numbers = #tpu.dot_dimension_numbers<[1], [0], [0], [1], [0, 0, 1, 1], [], []>} : vector<16x16xbf16>, vector<16x8xbf16>, vector<16x8xf32> -> vector<16x8xf32>
    %299 = arith.truncf %298 : vector<16x8xf32> to vector<16x8xbf16>
    %300 = vector.extract_strided_slice %236 {offsets = [2, 0, 0], sizes = [1, 8, 32], strides = [1, 1, 1]} : vector<4x8x32xbf16> to vector<1x8x32xbf16>
    %301 = vector.shape_cast %300 : vector<1x8x32xbf16> to vector<8x32xbf16>
    %cst_120 = arith.constant dense<0.000000e+00> : vector<16x32xf32>
    %302 = tpu.matmul %299, %301, %cst_120 {dimension_numbers = #tpu.dot_dimension_numbers<[1], [0], [0], [1], [0, 0, 1, 1], [], []>} : vector<16x8xbf16>, vector<8x32xbf16>, vector<16x32xf32> -> vector<16x32xf32>
    %303 = arith.addf %281, %302 : vector<16x32xf32>
    %304 = vector.extract_strided_slice %234 {offsets = [0, 24], sizes = [16, 8], strides = [1, 1]} : vector<16x96xbf16> to vector<16x8xbf16>
    %305 = vector.extract_strided_slice %234 {offsets = [0, 56], sizes = [16, 8], strides = [1, 1]} : vector<16x96xbf16> to vector<16x8xbf16>
    %306 = vector.extract_strided_slice %234 {offsets = [0, 88], sizes = [16, 8], strides = [1, 1]} : vector<16x96xbf16> to vector<16x8xbf16>
    %cst_121 = arith.constant dense<0.000000e+00> : vector<16x16xf32>
    %307 = tpu.matmul %304, %305, %cst_121 {dimension_numbers = #tpu.dot_dimension_numbers<[1], [1], [0], [0], [0, 0, 1, 0], [], []>} : vector<16x8xbf16>, vector<16x8xbf16>, vector<16x16xf32> -> vector<16x16xf32>
    %308 = arith.addf %307, %12 : vector<16x16xf32>
    %cst_122 = arith.constant dense<0xFF800000> : vector<16xf32>
    %309 = vector.multi_reduction <maximumf>, %308, %cst_122 [1] : vector<16x16xf32> to vector<16xf32>
    %310 = vector.shape_cast %309 : vector<16xf32> to vector<16x1xf32>
    %311 = vector.broadcast %310 : vector<16x1xf32> to vector<16x16xf32>
    %312 = arith.subf %308, %311 : vector<16x16xf32>
    %313 = math.exp %312 : vector<16x16xf32>
    %cst_123 = arith.constant dense<0.000000e+00> : vector<16xf32>
    %314 = vector.multi_reduction <add>, %313, %cst_123 [1] : vector<16x16xf32> to vector<16xf32>
    %315 = vector.shape_cast %314 : vector<16xf32> to vector<16x1xf32>
    %316 = tpu.reciprocal %315 {approx = true} : vector<16x1xf32> -> vector<16x1xf32>
    %317 = vector.broadcast %316 : vector<16x1xf32> to vector<16x16xf32>
    %318 = arith.mulf %313, %317 : vector<16x16xf32>
    %319 = arith.truncf %318 : vector<16x16xf32> to vector<16x16xbf16>
    %cst_124 = arith.constant dense<0.000000e+00> : vector<16x8xf32>
    %320 = tpu.matmul %319, %306, %cst_124 {dimension_numbers = #tpu.dot_dimension_numbers<[1], [0], [0], [1], [0, 0, 1, 1], [], []>} : vector<16x16xbf16>, vector<16x8xbf16>, vector<16x8xf32> -> vector<16x8xf32>
    %321 = arith.truncf %320 : vector<16x8xf32> to vector<16x8xbf16>
    %322 = vector.extract_strided_slice %236 {offsets = [3, 0, 0], sizes = [1, 8, 32], strides = [1, 1, 1]} : vector<4x8x32xbf16> to vector<1x8x32xbf16>
    %323 = vector.shape_cast %322 : vector<1x8x32xbf16> to vector<8x32xbf16>
    %cst_125 = arith.constant dense<0.000000e+00> : vector<16x32xf32>
    %324 = tpu.matmul %321, %323, %cst_125 {dimension_numbers = #tpu.dot_dimension_numbers<[1], [0], [0], [1], [0, 0, 1, 1], [], []>} : vector<16x8xbf16>, vector<8x32xbf16>, vector<16x32xf32> -> vector<16x32xf32>
    %325 = arith.addf %303, %324 : vector<16x32xf32>
    %326 = arith.addf %199, %325 : vector<16x32xf32>
    %c1_126 = arith.constant 1 : index
    %c0_127 = arith.constant 0 : index
    %c0_128 = arith.constant 0 : index
    %327 = vector.load %arg10[%c1_126, %c0_127, %c0_128] : memref<2x1x32xf32, #tpu.memory_space<vmem>>, vector<1x1x32xf32>
    %328 = vector.shape_cast %327 : vector<1x1x32xf32> to vector<1x32xf32>
    %329 = vector.broadcast %328 : vector<1x32xf32> to vector<16x32xf32>
    %330 = arith.addf %326, %329 : vector<16x32xf32>
    %c1_129 = arith.constant 1 : index
    %c0_130 = arith.constant 0 : index
    %c0_131 = arith.constant 0 : index
    %331 = vector.load %arg11[%c1_129, %c0_130, %c0_131] : memref<2x1x32xf32, #tpu.memory_space<vmem>>, vector<1x1x32xf32>
    %332 = vector.shape_cast %331 : vector<1x1x32xf32> to vector<1x32xf32>
    %c1_132 = arith.constant 1 : index
    %c0_133 = arith.constant 0 : index
    %c0_134 = arith.constant 0 : index
    %333 = vector.load %arg12[%c1_132, %c0_133, %c0_134] : memref<2x1x32xf32, #tpu.memory_space<vmem>>, vector<1x1x32xf32>
    %334 = vector.shape_cast %333 : vector<1x1x32xf32> to vector<1x32xf32>
    %cst_135 = arith.constant dense<0.000000e+00> : vector<16xf32>
    %335 = vector.multi_reduction <add>, %330, %cst_135 [1] : vector<16x32xf32> to vector<16xf32>
    %336 = vector.shape_cast %335 : vector<16xf32> to vector<16x1xf32>
    %cst_136 = arith.constant 3.200000e+01 : f32
    %337 = vector.broadcast %cst_136 : f32 to vector<16x1xf32>
    %338 = arith.divf %336, %337 : vector<16x1xf32>
    %339 = vector.broadcast %338 : vector<16x1xf32> to vector<16x32xf32>
    %340 = arith.subf %330, %339 : vector<16x32xf32>
    %341 = arith.mulf %340, %340 : vector<16x32xf32>
    %cst_137 = arith.constant dense<0.000000e+00> : vector<16xf32>
    %342 = vector.multi_reduction <add>, %341, %cst_137 [1] : vector<16x32xf32> to vector<16xf32>
    %343 = vector.shape_cast %342 : vector<16xf32> to vector<16x1xf32>
    %cst_138 = arith.constant 3.200000e+01 : f32
    %344 = vector.broadcast %cst_138 : f32 to vector<16x1xf32>
    %345 = arith.divf %343, %344 : vector<16x1xf32>
    %346 = vector.broadcast %338 : vector<16x1xf32> to vector<16x32xf32>
    %347 = arith.subf %330, %346 : vector<16x32xf32>
    %cst_139 = arith.constant 9.99999974E-6 : f32
    %348 = vector.broadcast %cst_139 : f32 to vector<16x1xf32>
    %349 = arith.addf %345, %348 : vector<16x1xf32>
    %350 = math.rsqrt %349 : vector<16x1xf32>
    %351 = vector.broadcast %350 : vector<16x1xf32> to vector<16x32xf32>
    %352 = arith.mulf %347, %351 : vector<16x32xf32>
    %353 = vector.broadcast %332 : vector<1x32xf32> to vector<16x32xf32>
    %354 = arith.mulf %352, %353 : vector<16x32xf32>
    %355 = vector.broadcast %334 : vector<1x32xf32> to vector<16x32xf32>
    %356 = arith.addf %354, %355 : vector<16x32xf32>
    %357 = arith.truncf %356 : vector<16x32xf32> to vector<16x32xbf16>
    %c1_140 = arith.constant 1 : index
    %c0_141 = arith.constant 0 : index
    %c0_142 = arith.constant 0 : index
    %358 = vector.load %arg13[%c1_140, %c0_141, %c0_142] : memref<2x32x128xbf16, #tpu.memory_space<vmem>>, vector<1x32x128xbf16>
    %359 = vector.shape_cast %358 : vector<1x32x128xbf16> to vector<32x128xbf16>
    %cst_143 = arith.constant dense<0.000000e+00> : vector<16x128xf32>
    %360 = tpu.matmul %357, %359, %cst_143 {dimension_numbers = #tpu.dot_dimension_numbers<[1], [0], [0], [1], [0, 0, 1, 1], [], []>} : vector<16x32xbf16>, vector<32x128xbf16>, vector<16x128xf32> -> vector<16x128xf32>
    %c1_144 = arith.constant 1 : index
    %c0_145 = arith.constant 0 : index
    %c0_146 = arith.constant 0 : index
    %361 = vector.load %arg14[%c1_144, %c0_145, %c0_146] : memref<2x1x128xf32, #tpu.memory_space<vmem>>, vector<1x1x128xf32>
    %362 = vector.shape_cast %361 : vector<1x1x128xf32> to vector<1x128xf32>
    %363 = vector.broadcast %362 : vector<1x128xf32> to vector<16x128xf32>
    %364 = arith.addf %360, %363 : vector<16x128xf32>
    %cst_147 = arith.constant 5.000000e-01 : f32
    %365 = vector.broadcast %cst_147 : f32 to vector<16x128xf32>
    %366 = arith.mulf %365, %364 : vector<16x128xf32>
    %cst_148 = arith.constant 4.471500e-02 : f32
    %367 = vector.broadcast %cst_148 : f32 to vector<16x128xf32>
    %368 = arith.mulf %367, %364 : vector<16x128xf32>
    %369 = arith.mulf %368, %364 : vector<16x128xf32>
    %370 = arith.mulf %369, %364 : vector<16x128xf32>
    %371 = arith.addf %364, %370 : vector<16x128xf32>
    %cst_149 = arith.constant 0.797884583 : f32
    %372 = vector.broadcast %cst_149 : f32 to vector<16x128xf32>
    %373 = arith.mulf %372, %371 : vector<16x128xf32>
    %374 = math.tanh %373 : vector<16x128xf32>
    %cst_150 = arith.constant 1.000000e+00 : f32
    %375 = vector.broadcast %cst_150 : f32 to vector<16x128xf32>
    %376 = arith.addf %375, %374 : vector<16x128xf32>
    %377 = arith.mulf %366, %376 : vector<16x128xf32>
    %378 = arith.truncf %377 : vector<16x128xf32> to vector<16x128xbf16>
    %c1_151 = arith.constant 1 : index
    %c0_152 = arith.constant 0 : index
    %c0_153 = arith.constant 0 : index
    %379 = vector.load %arg15[%c1_151, %c0_152, %c0_153] : memref<2x128x32xbf16, #tpu.memory_space<vmem>>, vector<1x128x32xbf16>
    %380 = vector.shape_cast %379 : vector<1x128x32xbf16> to vector<128x32xbf16>
    %cst_154 = arith.constant dense<0.000000e+00> : vector<16x32xf32>
    %381 = tpu.matmul %378, %380, %cst_154 {dimension_numbers = #tpu.dot_dimension_numbers<[1], [0], [0], [1], [0, 0, 1, 1], [], []>} : vector<16x128xbf16>, vector<128x32xbf16>, vector<16x32xf32> -> vector<16x32xf32>
    %c1_155 = arith.constant 1 : index
    %c0_156 = arith.constant 0 : index
    %c0_157 = arith.constant 0 : index
    %382 = vector.load %arg16[%c1_155, %c0_156, %c0_157] : memref<2x1x32xf32, #tpu.memory_space<vmem>>, vector<1x1x32xf32>
    %383 = vector.shape_cast %382 : vector<1x1x32xf32> to vector<1x32xf32>
    %384 = vector.broadcast %383 : vector<1x32xf32> to vector<16x32xf32>
    %385 = arith.addf %381, %384 : vector<16x32xf32>
    %386 = arith.addf %330, %385 : vector<16x32xf32>
    %c0_158 = arith.constant 0 : index
    %c0_159 = arith.constant 0 : index
    %387 = vector.load %arg17[%c0_158, %c0_159] : memref<1x32xf32, #tpu.memory_space<vmem>>, vector<1x32xf32>
    %c0_160 = arith.constant 0 : index
    %c0_161 = arith.constant 0 : index
    %388 = vector.load %arg18[%c0_160, %c0_161] : memref<1x32xf32, #tpu.memory_space<vmem>>, vector<1x32xf32>
    %cst_162 = arith.constant dense<0.000000e+00> : vector<16xf32>
    %389 = vector.multi_reduction <add>, %386, %cst_162 [1] : vector<16x32xf32> to vector<16xf32>
    %390 = vector.shape_cast %389 : vector<16xf32> to vector<16x1xf32>
    %cst_163 = arith.constant 3.200000e+01 : f32
    %391 = vector.broadcast %cst_163 : f32 to vector<16x1xf32>
    %392 = arith.divf %390, %391 : vector<16x1xf32>
    %393 = vector.broadcast %392 : vector<16x1xf32> to vector<16x32xf32>
    %394 = arith.subf %386, %393 : vector<16x32xf32>
    %395 = arith.mulf %394, %394 : vector<16x32xf32>
    %cst_164 = arith.constant dense<0.000000e+00> : vector<16xf32>
    %396 = vector.multi_reduction <add>, %395, %cst_164 [1] : vector<16x32xf32> to vector<16xf32>
    %397 = vector.shape_cast %396 : vector<16xf32> to vector<16x1xf32>
    %cst_165 = arith.constant 3.200000e+01 : f32
    %398 = vector.broadcast %cst_165 : f32 to vector<16x1xf32>
    %399 = arith.divf %397, %398 : vector<16x1xf32>
    %400 = vector.broadcast %392 : vector<16x1xf32> to vector<16x32xf32>
    %401 = arith.subf %386, %400 : vector<16x32xf32>
    %cst_166 = arith.constant 9.99999974E-6 : f32
    %402 = vector.broadcast %cst_166 : f32 to vector<16x1xf32>
    %403 = arith.addf %399, %402 : vector<16x1xf32>
    %404 = math.rsqrt %403 : vector<16x1xf32>
    %405 = vector.broadcast %404 : vector<16x1xf32> to vector<16x32xf32>
    %406 = arith.mulf %401, %405 : vector<16x32xf32>
    %407 = vector.broadcast %387 : vector<1x32xf32> to vector<16x32xf32>
    %408 = arith.mulf %406, %407 : vector<16x32xf32>
    %409 = vector.broadcast %388 : vector<1x32xf32> to vector<16x32xf32>
    %410 = arith.addf %408, %409 : vector<16x32xf32>
    %411 = arith.truncf %410 : vector<16x32xf32> to vector<16x32xbf16>
    %c0_167 = arith.constant 0 : index
    %c0_168 = arith.constant 0 : index
    %412 = vector.load %arg19[%c0_167, %c0_168] : memref<32x128xbf16, #tpu.memory_space<vmem>>, vector<32x128xbf16>
    %cst_169 = arith.constant dense<0.000000e+00> : vector<16x128xf32>
    %413 = tpu.matmul %411, %412, %cst_169 {dimension_numbers = #tpu.dot_dimension_numbers<[1], [0], [0], [1], [0, 0, 1, 1], [], []>} : vector<16x32xbf16>, vector<32x128xbf16>, vector<16x128xf32> -> vector<16x128xf32>
    %c0_170 = arith.constant 0 : index
    %c0_171 = arith.constant 0 : index
    %414 = vector.load %arg20[%c0_170, %c0_171] : memref<16x128xf32, #tpu.memory_space<vmem>>, vector<16x128xf32>
    tpu.vector_store %arg20[%c0_170, %c0_171], %413 {strides = array<i32>} : memref<16x128xf32, #tpu.memory_space<vmem>>, vector<16x128xf32>,
    return
  }
  func.func @transform_0(%arg0: i32) -> (i32, i32) {
    %c0_i32 = arith.constant 0 : i32
    %c0_i32_0 = arith.constant 0 : i32
    return %arg0, %c0_i32 : i32, i32
  }
  func.func @transform_1(%arg0: i32) -> (i32, i32) {
    %c0_i32 = arith.constant 0 : i32
    %c0_i32_0 = arith.constant 0 : i32
    %c0_i32_1 = arith.constant 0 : i32
    return %c0_i32, %c0_i32_0 : i32, i32
  }
  func.func @transform_2(%arg0: i32) -> (i32, i32) {
    %c0_i32 = arith.constant 0 : i32
    %c0_i32_0 = arith.constant 0 : i32
    %c0_i32_1 = arith.constant 0 : i32
    return %c0_i32, %c0_i32_0 : i32, i32
  }
  func.func @transform_3(%arg0: i32) -> (i32, i32) {
    %c0_i32 = arith.constant 0 : i32
    %c0_i32_0 = arith.constant 0 : i32
    return %arg0, %c0_i32 : i32, i32
  }
  func.func @transform_4(%arg0: i32) -> (i32, i32, i32) {
    %c0_i32 = arith.constant 0 : i32
    %c0_i32_0 = arith.constant 0 : i32
    %c0_i32_1 = arith.constant 0 : i32
    %c0_i32_2 = arith.constant 0 : i32
    return %c0_i32, %c0_i32_0, %c0_i32_1 : i32, i32, i32
  }
  func.func @transform_5(%arg0: i32) -> (i32, i32, i32) {
    %c0_i32 = arith.constant 0 : i32
    %c0_i32_0 = arith.constant 0 : i32
    %c0_i32_1 = arith.constant 0 : i32
    %c0_i32_2 = arith.constant 0 : i32
    return %c0_i32, %c0_i32_0, %c0_i32_1 : i32, i32, i32
  }
  func.func @transform_6(%arg0: i32) -> (i32, i32, i32) {
    %c0_i32 = arith.constant 0 : i32
    %c0_i32_0 = arith.constant 0 : i32
    %c0_i32_1 = arith.constant 0 : i32
    %c0_i32_2 = arith.constant 0 : i32
    return %c0_i32, %c0_i32_0, %c0_i32_1 : i32, i32, i32
  }
  func.func @transform_7(%arg0: i32) -> (i32, i32, i32) {
    %c0_i32 = arith.constant 0 : i32
    %c0_i32_0 = arith.constant 0 : i32
    %c0_i32_1 = arith.constant 0 : i32
    %c0_i32_2 = arith.constant 0 : i32
    return %c0_i32, %c0_i32_0, %c0_i32_1 : i32, i32, i32
  }
  func.func @transform_8(%arg0: i32) -> (i32, i32, i32, i32) {
    %c0_i32 = arith.constant 0 : i32
    %c0_i32_0 = arith.constant 0 : i32
    %c0_i32_1 = arith.constant 0 : i32
    %c0_i32_2 = arith.constant 0 : i32
    %c0_i32_3 = arith.constant 0 : i32
    return %c0_i32, %c0_i32_0, %c0_i32_1, %c0_i32_2 : i32, i32, i32, i32
  }
  func.func @transform_9(%arg0: i32) -> (i32, i32, i32) {
    %c0_i32 = arith.constant 0 : i32
    %c0_i32_0 = arith.constant 0 : i32
    %c0_i32_1 = arith.constant 0 : i32
    %c0_i32_2 = arith.constant 0 : i32
    return %c0_i32, %c0_i32_0, %c0_i32_1 : i32, i32, i32
  }
  func.func @transform_10(%arg0: i32) -> (i32, i32, i32) {
    %c0_i32 = arith.constant 0 : i32
    %c0_i32_0 = arith.constant 0 : i32
    %c0_i32_1 = arith.constant 0 : i32
    %c0_i32_2 = arith.constant 0 : i32
    return %c0_i32, %c0_i32_0, %c0_i32_1 : i32, i32, i32
  }
  func.func @transform_11(%arg0: i32) -> (i32, i32, i32) {
    %c0_i32 = arith.constant 0 : i32
    %c0_i32_0 = arith.constant 0 : i32
    %c0_i32_1 = arith.constant 0 : i32
    %c0_i32_2 = arith.constant 0 : i32
    return %c0_i32, %c0_i32_0, %c0_i32_1 : i32, i32, i32
  }
  func.func @transform_12(%arg0: i32) -> (i32, i32, i32) {
    %c0_i32 = arith.constant 0 : i32
    %c0_i32_0 = arith.constant 0 : i32
    %c0_i32_1 = arith.constant 0 : i32
    %c0_i32_2 = arith.constant 0 : i32
    return %c0_i32, %c0_i32_0, %c0_i32_1 : i32, i32, i32
  }
  func.func @transform_13(%arg0: i32) -> (i32, i32, i32) {
    %c0_i32 = arith.constant 0 : i32
    %c0_i32_0 = arith.constant 0 : i32
    %c0_i32_1 = arith.constant 0 : i32
    %c0_i32_2 = arith.constant 0 : i32
    return %c0_i32, %c0_i32_0, %c0_i32_1 : i32, i32, i32
  }
  func.func @transform_14(%arg0: i32) -> (i32, i32, i32) {
    %c0_i32 = arith.constant 0 : i32
    %c0_i32_0 = arith.constant 0 : i32
    %c0_i32_1 = arith.constant 0 : i32
    %c0_i32_2 = arith.constant 0 : i32
    return %c0_i32, %c0_i32_0, %c0_i32_1 : i32, i32, i32
  }
  func.func @transform_15(%arg0: i32) -> (i32, i32, i32) {
    %c0_i32 = arith.constant 0 : i32
    %c0_i32_0 = arith.constant 0 : i32
    %c0_i32_1 = arith.constant 0 : i32
    %c0_i32_2 = arith.constant 0 : i32
    return %c0_i32, %c0_i32_0, %c0_i32_1 : i32, i32, i32
  }
  func.func @transform_16(%arg0: i32) -> (i32, i32) {
    %c0_i32 = arith.constant 0 : i32
    %c0_i32_0 = arith.constant 0 : i32
    %c0_i32_1 = arith.constant 0 : i32
    return %c0_i32, %c0_i32_0 : i32, i32
  }
  func.func @transform_17(%arg0: i32) -> (i32, i32) {
    %c0_i32 = arith.constant 0 : i32
    %c0_i32_0 = arith.constant 0 : i32
    %c0_i32_1 = arith.constant 0 : i32
    return %c0_i32, %c0_i32_0 : i32, i32
  }
  func.func @transform_18(%arg0: i32) -> (i32, i32) {
    %c0_i32 = arith.constant 0 : i32
    %c0_i32_0 = arith.constant 0 : i32
    %c0_i32_1 = arith.constant 0 : i32
    return %c0_i32, %c0_i32_0 : i32, i32
  }
  func.func @transform_19(%arg0: i32) -> (i32, i32) {
    %c0_i32 = arith.constant 0 : i32
    %c0_i32_0 = arith.constant 0 : i32
    return %arg0, %c0_i32 : i32, i32
  }
}

</mosaic_0001>

<bundles_post_ra>
// kernel: gpt_forward.1
= control target key start
LH: loop header
LB: loop body
LE: loop exit
PB: predicated region body
PF: predicated region fallthrough
CT: control target
= control target key end

     0   :  { %s3662_s0 = inlined_call_operand.vmem [shape: s32[16,1], index: 0, kind: input, shape index: {}]   ;;  %s3663_s1 = inlined_call_operand.vmem [shape: f32[16,16], index: 1, kind: input, shape index: {}]   ;;  %s3664_s2 = inlined_call_operand.vmem [shape: bf16[64,32], index: 2, kind: input, shape index: {}]   ;;  %s3665_s3 = inlined_call_operand.vmem [shape: f32[16,32], index: 3, kind: input, shape index: {}]   ;;  %s3666_s4 = inlined_call_operand.vmem [shape: f32[2,1,32], index: 4, kind: input, shape index: {}]   ;;  %s3667_s5 = inlined_call_operand.vmem [shape: f32[2,1,32], index: 5, kind: input, shape index: {}]   ;;  %s3668_s6 = inlined_call_operand.vmem [shape: bf16[2,32,96], index: 6, kind: input, shape index: {}]   ;;  %s3669_s7 = inlined_call_operand.vmem [shape: f32[2,1,96], index: 7, kind: input, shape index: {}]   ;;  %s3670_s8 = inlined_call_operand.vmem [shape: bf16[2,4,8,32], index: 8, kind: input, shape index: {}]   ;;  %s3671_s9 = inlined_call_operand.vmem [shape: f32[2,1,32], index: 9, kind: input, shape index: {}]   ;;  %s3672_s10 = inlined_call_operand.vmem [shape: f32[2,1,32], index: 10, kind: input, shape index: {}]   ;;  %s3673_s11 = inlined_call_operand.vmem [shape: f32[2,1,32], index: 11, kind: input, shape index: {}]   ;;  %s3674_s12 = inlined_call_operand.vmem [shape: bf16[2,32,128], index: 12, kind: input, shape index: {}]   ;;  %s3675_s13 = inlined_call_operand.vmem [shape: f32[2,1,128], index: 13, kind: input, shape index: {}]   ;;  %s3676_s14 = inlined_call_operand.vmem [shape: bf16[2,128,32], index: 14, kind: input, shape index: {}]   ;;  %s3677_s15 = inlined_call_operand.vmem [shape: f32[2,1,32], index: 15, kind: input, shape index: {}]   ;;  %s3678_s16 = inlined_call_operand.vmem [shape: f32[1,32], index: 16, kind: input, shape index: {}]   ;;  %s3679_s17 = inlined_call_operand.vmem [shape: f32[1,32], index: 17, kind: input, shape index: {}]   ;;  %s3680_s18 = inlined_call_operand.vmem [shape: bf16[32,128], index: 18, kind: input, shape index: {}]   ;;  %s3681_s19 = inlined_call_operand.hbm [shape: f32[16,128], index: 19, kind: output, shape index: {}]  }
   0x1   :  { %3691 = sst [smem:[#allocation5_spill]] %s3662_s0 }
   0x2   :  { %3692 = sst [smem:[#allocation6_spill]] %s3663_s1 }
   0x3   :  { %3693 = sst [smem:[#allocation7_spill]] %s3664_s2 }
   0x4   :  { %3694 = sst [smem:[#allocation8_spill]] %s3665_s3 }
   0x5   :  { %s3695_s20 = sld [smem:[#allocation5_spill]]  ;;  %v3006_v1 = vmov 0   ;;  %v3007_v2 = vmov 0.0   ;;  %s3696_s22 = sld [smem:[#allocation7_spill]]  ;;  %vm3008_vm0 = vmmov 0  }
   0x6   :  { %2857 = vset.pattern.permute.xlu0 %v3006_v1  ;;  %2604 = vmatprep.subr.bf16.mxu1 %v3007_v2 }
   0x7   :  { %2630 = vmatprep.subr.bf16.mxu0 %v3007_v2  ;;  %2612 = vmatprep.mubr.msk.bf16.mxu1 %vm3008_vm0, %v3007_v2 }
   0x8   :  { %2632 = vmatprep.mubr.msk.bf16.mxu0 %vm3008_vm0, %v3007_v2 }
   0xb   :  { %v64_v0 = vld [vmem:[%s3695_s20] sm:$0xff]  ;;  %v65_v4 = vld [vmem:[%s3695_s20 + $0x8] sm:$0xff]  ;;  %v2860_v6 = vld [vmem:[%s3696_s22 + $0x10] sm:$0xff]  }
   0xc   :  { %v2858_v3 = vld [vmem:[%s3696_s22] sm:$0xff]   ;;  %69 = vperm.xlu0 %2857, %v64_v0   ;;  %v2859_v5 = vld [vmem:[%s3696_s22 + $0x8] sm:$0xff]   ;;  %v2861_v7 = vld [vmem:[%s3696_s22 + $0x18] sm:$0xff]  }
   0xd   :  { %2605 = vmatpush3.bf16.msra.mxu1 %v2858_v3 }
   0xe   :  { %2606 = vmatprep.subr.bf16.mxu1 %v3007_v2 }
  0x10   :  { %72 = vperm.xlu0 %2857, %v65_v4  }
  0x11   :  { %2607 = vmatpush3.bf16.msra.mxu1 %v2859_v5 }
  0x12   :  { %2608 = vmatprep.subr.bf16.mxu1 %v3007_v2 }
  0x15   :  { %2609 = vmatpush3.bf16.msra.mxu1 %v2860_v6 }
  0x16   :  { %2610 = vmatprep.subr.bf16.mxu1 %v3007_v2 }
  0x19   :  { %2611 = vmatpush3.bf16.msra.mxu1 %v2861_v7 }
  0x1a   :  { %2616 = vmatprep.subr.bf16.mxu1 %v3007_v2 }
  0x1b   :  { %24 = vsyncpa [#allocation3], 0  ;;  %v66_v8 = vlaneseq  ;;  %vm113_vm3 = vcmask 523264   ;;  %s3697_s30 = sld [smem:[#allocation8_spill]]  ;;  %vm162_vm4 = vcmask 261120   ;;  %v2862_v35 = vld [vmem:[%s3668_s6] sm:$0xff]  }
  0x1c   :  { %v2863_v36 = vld [vmem:[%s3668_s6 + $0x8] sm:$0xff]   ;;  %v2409_v45 = vld [vmem:[%s3666_s4] ss:$0 sm:$0xff]  ;;  %s3009_s29 = smov 96   ;;  %vm282_vm5 = vcmask 64512   ;;  %s3698_s20 = sld [smem:[#allocation6_spill]] }
  0x1d   :  { %v67_v9 = vand.u32 127, %v66_v8  ;;  %v2410_v49 = vld [vmem:[%s3667_s5] ss:$0 sm:$0xff]  ;;  %vm330_vm6 = vcmask 130048   ;;  %s3010_s22 = smov 88   ;;  %s3011_s2 = smov 64  }
  0x1e   :  { %v2411_v54 = vld [vmem:[%s3669_s7] ss:$0 sm:$0xff]  ;;  %s3012_s23 = smov 120   ;;  %s3013_s24 = smov 80   ;;  %vm527_vm7 = vcmask 1043456  }
  0x1f   :  { %s3690_s25 = smov 112   ;;  %s3015_s3 = smov 56  }
  0x20   :  { %s3687_s21 = smov 104   ;;  %s3689_s1 = smov 72  }
  0x21   :  { %v87_v15 = vld [vmem:[%s3697_s30] sm:$0xff]  ;;  %v88_v17 = vld [vmem:[%s3697_s30 + $0x8] sm:$0xff]  ;;  %s3688_s30 = smov 48   ;;  %s3686_s28 = smov 40  }
  0x22   :  { %v3206_v0 = vld [vmem:[%s3698_s20] sm:$0xff]  ;;  %v3211_v3 = vld [vmem:[%s3698_s20 + $0x8] sm:$0xff]  ;;  %s3701_s0 = smov 48  }
  0x8b   :  { %v70_v10 = vpop.permute.xlu0 %69 }
  0x8c   :  { %vm74_vm1 = vcmp.eq.s32.totalorder %v67_v9, %v70_v10 }
  0x8d   :  { %v76_v12 = vsel %vm74_vm1, 1.0, %v3007_v2 }
  0x8f   :  { %v73_v11 = vpop.permute.xlu0 %72 }
  0x90   :  { %vm75_vm2 = vcmp.eq.s32.totalorder %v67_v9, %v73_v11 }
  0x91   :  { %v77_v13 = vsel %vm75_vm2, 1.0, %v3007_v2 }
  0x92   :  { %v78_v14 = vpack.c.bf16 %v77_v13, %v76_v12 }
  0x94   :  { %2613 = vmatmul.mubr.msk.bf16.vlgmr.msra.gmra.mrb[0].mxu1 %vm113_vm3, %v78_v14 }
  0x95   :  { %2620 = vmatprep.mubr.msk.bf16.mxu1 %vm3008_vm0, %v3007_v2  ;;  %2617 = vmatpush3.bf16.msra.mxu1 %v2862_v35 }
  0x96   :  { %2618 = vmatprep.subr.bf16.mxu1 %v3007_v2 }
  0x99   :  { %2619 = vmatpush3.bf16.msra.mxu1 %v2863_v36 }
  0x9a   :  { %2624 = vmatprep.subr.bf16.mxu1 %v3007_v2 }
 0x167   :  { %v151_v16 = vpop.f32.mrb[0].mxu1 }
 0x168   :  { %v3161_v18 = vadd.f32 %v151_v16, %v87_v15  ;;  %v2614_v19 = vpop.f32.mrb[1].mxu1 }
 0x169   :  { %v154_v20 = vpop.f32.mrb[2].mxu1 }
 0x16a   :  { %v3163_v21 = vadd.f32 %v154_v20, %v88_v17  ;;  %v2615_v22 = vpop.f32.mrb[3].mxu1  ;;  %v163_v23 = vsel %vm162_vm4, %v3161_v18, 0.0 }
 0x16b   :  { %164 = vadd.xlane.f32.xlu1 %v163_v23 }
 0x16c   :  { %v166_v24 = vsel %vm162_vm4, %v3163_v21, 0.0 }
 0x16f   :  { %167 = vadd.xlane.f32.xlu1 %v166_v24 }
 0x1f8   :  { %v165_v25 = vpop.xlane.xlu1 %164 }
 0x1f9   :  { %v170_v26 = vmul.f32 0.03125, %v165_v25 }
 0x1fb   :  { %v172_v27 = vsub.f32 %v3161_v18, %v170_v26 }
 0x1fc   :  { %v168_v28 = vpop.xlane.xlu1 %167 }
 0x1fd   :  { %v171_v29 = vmul.f32 0.03125, %v168_v28  ;;  %v174_v30 = vmul.f32 %v172_v27, %v172_v27 }
 0x1ff   :  { %v173_v31 = vsub.f32 %v3163_v21, %v171_v29  ;;  %v176_v32 = vsel %vm162_vm4, %v174_v30, 0.0 }
 0x200   :  { %177 = vadd.xlane.f32.xlu0 %v176_v32 }
 0x201   :  { %v175_v33 = vmul.f32 %v173_v31, %v173_v31 }
 0x203   :  { %v179_v34 = vsel %vm162_vm4, %v175_v33, 0.0 }
 0x204   :  { %180 = vadd.xlane.f32.xlu1 %v179_v34 }
 0x28d   :  { %v178_v37 = vpop.xlane.xlu0 %177 }
 0x28e   :  { %v182_v38 = vmul.f32 0.03125, %v178_v37 }
 0x290   :  { %v184_v39 = vadd.f32 1e-05, %v182_v38 }
 0x291   :  { %v181_v40 = vpop.xlane.xlu1 %180 }
 0x292   :  { %2888 = vrsqrt.f32 %v184_v39  ;;  %v183_v41 = vmul.f32 0.03125, %v181_v40 }
 0x294   :  { %v185_v42 = vadd.f32 1e-05, %v183_v41 }
 0x296   :  { %2890 = vrsqrt.f32 %v185_v42 }
 0x29c   :  { %v2889_v43 = vpop.eup %2888 }
 0x29d   :  { %v188_v44 = vmul.f32 %v2889_v43, %v172_v27 }
 0x29f   :  { %v196_v47 = vmul.f32 %v2409_v45, %v188_v44 }
 0x2a0   :  { %v2891_v46 = vpop.eup %2890 }
 0x2a1   :  { %v189_v48 = vmul.f32 %v2891_v46, %v173_v31  ;;  %v204_v51 = vadd.f32 %v2410_v49, %v196_v47 }
 0x2a3   :  { %v197_v50 = vmul.f32 %v2409_v45, %v189_v48 }
 0x2a5   :  { %v205_v52 = vadd.f32 %v2410_v49, %v197_v50 }
 0x2a7   :  { %v206_v53 = vpack.c.bf16 %v205_v52, %v204_v51 }
 0x2a9   :  { %2621 = vmatmul.mubr.msk.bf16.vlgmr.msra.gmra.mrb[4].mxu1 %vm162_vm4, %v206_v53 }
 0x2aa   :  { %2626 = vmatprep.mubr.msk.bf16.mxu1 %vm3008_vm0, %v3007_v2 }
 0x37c   :  { %v267_v55 = vpop.f32.mrb[4].mxu1 }
 0x37d   :  { %v2622_v56 = vpop.f32.mrb[5].mxu1  ;;  %v268_v58 = vadd.f32 %v2411_v54, %v267_v55 }
 0x37e   :  { %v270_v57 = vpop.f32.mrb[6].mxu1 }
 0x37f   :  { %v271_v59 = vadd.f32 %v2411_v54, %v270_v57  ;;  %v2623_v60 = vpop.f32.mrb[7].mxu1  ;;  %v276_v57 = vld [vmem:[%s3670_s8 + $0x4] sm:$0xf] }
 0x381   :  { %v3193_v61 = vpack.c.bf16 %v271_v59, %v268_v58  ;;  %v529_v58 = vsel %vm527_vm7, %v276_v57, 0 }
 0x383   :  { %280 = vrot.lane.b32.xlu1 %v3193_v61, %s3009_s29 }
 0x3f5   :  { %v281_v62 = vpop.permute.xlu1 %280 }
 0x3f6   :  { %v287_v63 = vsel %vm282_vm5, %v281_v62, 0 }
 0x3f7   :  { %2625 = vmatpush3.bf16.xpose.msra.mxu1 %v287_v63 }
 0x3f8   :  { %2648 = vmatprep.subr.bf16.mxu1 %v3007_v2 }
 0x3fe   :  { %2627 = vmatmul.mubr.msk.bf16.vlgmr.msra.gmra.mrb[8].mxu1 %vm282_vm5, %v3193_v61 }
 0x3ff   :  { %2650 = vmatprep.mubr.msk.bf16.mxu1 %vm3008_vm0, %v3007_v2  ;;  %2649 = vmatpush3.bf16.msra.mxu1 %v529_v58  ;;  %v277_v58 = vld [vmem:[%s3670_s8 + $0x8] sm:$0xf] }
 0x400   :  { %2660 = vmatprep.subr.bf16.mxu1 %v3007_v2 }
 0x4d1   :  { %v323_v1 = vpop.f32.mrb[8].mxu1 }
 0x4d2   :  { %v324_v4 = vadd.f32 %v323_v1, %v3206_v0  ;;  %v2628_v5 = vpop.f32.mrb[9].mxu1 }
 0x4d3   :  { %v326_v6 = vpop.f32.mrb[10].mxu1 }
 0x4d4   :  { %v327_v7 = vadd.f32 %v326_v6, %v3211_v3  ;;  %v2629_v8 = vpop.f32.mrb[11].mxu1  ;;  %v331_v9 = vsel %vm330_vm6, %v324_v4, -inf }
 0x4d5   :  { %332 = vmax.xlane.f32.xlu1 %v331_v9 }
 0x4d6   :  { %v334_v10 = vsel %vm330_vm6, %v327_v7, -inf }
 0x4d7   :  { %335 = vmax.xlane.f32.xlu0 %v334_v10 }
 0x4e6   :  { %404 = vrot.lane.b32.xlu1 %v3193_v61, %s3010_s22 }
 0x562   :  { %v333_v11 = vpop.xlane.xlu1 %332 }
 0x563   :  { %v337_v12 = vsub.f32 %v324_v4, %v333_v11  ;;  %v275_v4 = vld [vmem:[%s3670_s8] sm:$0xf] }
 0x564   :  { %v336_v13 = vpop.xlane.xlu0 %335  ;;  %v576_v8 = vsel %vm527_vm7, %v275_v4, 0 }
 0x565   :  { %v339_v14 = vmul.f32 1.442695, %v337_v12  ;;  %v338_v15 = vsub.f32 %v327_v7, %v336_v13 }
 0x566   :  { %v405_v30 = vpop.permute.xlu1 %404 }
 0x567   :  { %2892 = vpow2.f32 %v339_v14  ;;  %v341_v16 = vmul.f32 1.442695, %v338_v15  ;;  %v410_v32 = vsel %vm282_vm5, %v405_v30, 0 }
 0x569   :  { %2894 = vpow2.f32 %v341_v16 }
 0x571   :  { %v2893_v17 = vpop.eup %2892 }
 0x572   :  { %v343_v19 = vsel %vm330_vm6, %v2893_v17, 0.0 }
 0x573   :  { %v2895_v20 = vpop.eup %2894  ;;  %344 = vadd.xlane.f32.xlu0 %v343_v19 }
 0x574   :  { %v346_v22 = vsel %vm330_vm6, %v2895_v20, 0.0 }
 0x577   :  { %347 = vadd.xlane.f32.xlu0 %v346_v22 }
 0x58d   :  { %354 = vrot.lane.b32.xlu0 %v3193_v61, %s3011_s2 }
 0x591   :  { %402 = vrot.lane.b32.xlu0 %v3193_v61, %s3012_s23 }
 0x600   :  { %v345_v23 = vpop.xlane.xlu0 %344 }
 0x601   :  { %2896 = vrcp.f32 %v345_v23 }
 0x604   :  { %v348_v24 = vpop.xlane.xlu0 %347 }
 0x605   :  { %2898 = vrcp.f32 %v348_v24 }
 0x608   :  { %v355_v25 = vpop.permute.xlu0 %354 }
 0x609   :  { %2631 = vmatpush3.bf16.msra.mxu0 %v355_v25 }
 0x60a   :  { %2636 = vmatprep.subr.bf16.mxu0 %v3007_v2 }
 0x60b   :  { %v2897_v26 = vpop.eup %2896 }
 0x60c   :  { %v351_v28 = vmul.f32 %v2897_v26, %v2893_v17  ;;  %v403_v33 = vpop.permute.xlu0 %402 }
 0x60f   :  { %v2899_v27 = vpop.eup %2898 }
 0x610   :  { %v352_v29 = vmul.f32 %v2899_v27, %v2895_v20 }
 0x612   :  { %v353_v31 = vpack.c.bf16 %v352_v29, %v351_v28 }
 0x614   :  { %2633 = vmatmul.mubr.msk.bf16.vlgmr.msra.gmra.mrb[0].mxu0 %vm330_vm6, %v353_v31 }
 0x615   :  { %2637 = vmatpush3.bf16.xpose.msra.mxu0 %v410_v32  ;;  %2638 = vmatprep.mubr.msk.bf16.mxu0 %vm3008_vm0, %v3007_v2 }
 0x616   :  { %2642 = vmatprep.subr.bf16.mxu0 %v3007_v2 }
 0x61c   :  { %2639 = vmatmul.mubr.msk.bf16.vlgmr.msra.gmra.mrb[4].mxu0 %vm282_vm5, %v403_v33 }
 0x61d   :  { %2644 = vmatprep.mubr.msk.bf16.mxu0 %vm3008_vm0, %v3007_v2 }
 0x6e7   :  { %v394_v34 = vpop.f32.mrb[0].mxu0 }
 0x6e8   :  { %v2634_v35 = vpop.f32.mrb[1].mxu0 }
 0x6e9   :  { %v397_v36 = vpop.f32.mrb[2].mxu0 }
 0x6ea   :  { %v401_v37 = vpack.c.bf16 %v397_v36, %v394_v34  ;;  %v2635_v38 = vpop.f32.mrb[3].mxu0 }
 0x6ef   :  { %v446_v39 = vpop.f32.mrb[4].mxu0 }
 0x6f0   :  { %v447_v40 = vadd.f32 %v446_v39, %v3206_v0  ;;  %v2640_v41 = vpop.f32.mrb[5].mxu0 }
 0x6f1   :  { %v449_v42 = vpop.f32.mrb[6].mxu0 }
 0x6f2   :  { %v450_v43 = vadd.f32 %v449_v42, %v3211_v3  ;;  %v2641_v44 = vpop.f32.mrb[7].mxu0  ;;  %v453_v45 = vsel %vm330_vm6, %v447_v40, -inf }
 0x6f3   :  { %454 = vmax.xlane.f32.xlu0 %v453_v45 }
 0x6f4   :  { %v456_v46 = vsel %vm330_vm6, %v450_v43, -inf }
 0x6f5   :  { %457 = vmax.xlane.f32.xlu1 %v456_v46 }
 0x706   :  { %621 = vrot.lane.b32.xlu1 %v3193_v61, %s3013_s24 }
 0x70a   :  { %619 = vrot.lane.b32.xlu1 %v3193_v61, %s3690_s25 }
 0x780   :  { %v455_v47 = vpop.xlane.xlu0 %454 }
 0x781   :  { %v459_v48 = vsub.f32 %v447_v40, %v455_v47 }
 0x782   :  { %v458_v49 = vpop.xlane.xlu1 %457 }
 0x783   :  { %v461_v50 = vmul.f32 1.442695, %v459_v48  ;;  %v460_v51 = vsub.f32 %v450_v43, %v458_v49 }
 0x785   :  { %2900 = vpow2.f32 %v461_v50  ;;  %v463_v52 = vmul.f32 1.442695, %v460_v51 }
 0x786   :  { %v622_v11 = vpop.permute.xlu1 %621 }
 0x787   :  { %2902 = vpow2.f32 %v463_v52  ;;  %v627_v15 = vsel %vm282_vm5, %v622_v11, 0 }
 0x78a   :  { %v620_v22 = vpop.permute.xlu1 %619 }
 0x78f   :  { %v2901_v53 = vpop.eup %2900 }
 0x790   :  { %v465_v54 = vsel %vm330_vm6, %v2901_v53, 0.0 }
 0x791   :  { %v2903_v55 = vpop.eup %2902  ;;  %466 = vadd.xlane.f32.xlu0 %v465_v54 }
 0x792   :  { %v468_v56 = vsel %vm330_vm6, %v2903_v55, 0.0 }
 0x795   :  { %469 = vadd.xlane.f32.xlu0 %v468_v56 }
 0x7ab   :  { %476 = vrot.lane.b32.xlu0 %v3193_v61, %s3015_s3 }
 0x81e   :  { %v467_v59 = vpop.xlane.xlu0 %466 }
 0x81f   :  { %2904 = vrcp.f32 %v467_v59  ;;  %v745_v59 = vsel %vm527_vm7, %v277_v58, 0 }
 0x822   :  { %v470_v60 = vpop.xlane.xlu0 %469 }
 0x823   :  { %2906 = vrcp.f32 %v470_v60 }
 0x826   :  { %v477_v62 = vpop.permute.xlu0 %476 }
 0x827   :  { %2643 = vmatpush3.bf16.msra.mxu0 %v477_v62 }
 0x828   :  { %2654 = vmatprep.subr.bf16.mxu0 %v3007_v2 }
 0x829   :  { %v2905_v63 = vpop.eup %2904 }
 0x82a   :  { %v473_v5 = vmul.f32 %v2905_v63, %v2901_v53 }
 0x82d   :  { %v2907_v1 = vpop.eup %2906 }
 0x82e   :  { %v474_v6 = vmul.f32 %v2907_v1, %v2903_v55 }
 0x830   :  { %v475_v7 = vpack.c.bf16 %v474_v6, %v473_v5 }
 0x832   :  { %2645 = vmatmul.mubr.msk.bf16.vlgmr.msra.gmra.mrb[8].mxu0 %vm330_vm6, %v475_v7 }
 0x833   :  { %2655 = vmatpush3.bf16.msra.mxu0 %v576_v8  ;;  %2656 = vmatprep.mubr.msk.bf16.mxu0 %vm3008_vm0, %v3007_v2 }
 0x834   :  { %2666 = vmatprep.subr.bf16.mxu0 %v3007_v2 }
 0x83a   :  { %2657 = vmatmul.mubr.msk.bf16.vlgmr.msra.gmra.mrb[12].mxu0 %vm282_vm5, %v401_v37 }
 0x83b   :  { %2668 = vmatprep.mubr.msk.bf16.mxu0 %vm3008_vm0, %v3007_v2 }
 0x905   :  { %v516_v9 = vpop.f32.mrb[8].mxu0 }
 0x906   :  { %v2646_v10 = vpop.f32.mrb[9].mxu0 }
 0x907   :  { %v519_v12 = vpop.f32.mrb[10].mxu0 }
 0x908   :  { %v523_v13 = vpack.c.bf16 %v519_v12, %v516_v9  ;;  %v2647_v14 = vpop.f32.mrb[11].mxu0 }
 0x90a   :  { %2651 = vmatmul.mubr.msk.bf16.vlgmr.msra.gmra.mrb[12].mxu1 %vm282_vm5, %v523_v13 }
 0x90b   :  { %2661 = vmatpush3.bf16.xpose.msra.mxu1 %v627_v15  ;;  %2662 = vmatprep.mubr.msk.bf16.mxu1 %vm3008_vm0, %v3007_v2 }
 0x90c   :  { %2672 = vmatprep.subr.bf16.mxu1 %v3007_v2 }
 0x90d   :  { %v612_v16 = vpop.f32.mrb[12].mxu0 }
 0x90e   :  { %v2658_v17 = vpop.f32.mrb[13].mxu0 }
 0x90f   :  { %v615_v19 = vpop.f32.mrb[14].mxu0 }
 0x910   :  { %v2659_v20 = vpop.f32.mrb[15].mxu0 }
 0x912   :  { %2663 = vmatmul.mubr.msk.bf16.vlgmr.msra.gmra.mrb[16].mxu1 %vm282_vm5, %v620_v22 }
 0x913   :  { %2674 = vmatprep.mubr.msk.bf16.mxu1 %vm3008_vm0, %v3007_v2  ;;  %2673 = vmatpush3.bf16.msra.mxu1 %v745_v59 }
 0x914   :  { %2684 = vmatprep.subr.bf16.mxu1 %v3007_v2 }
 0x9dd   :  { %v565_v23 = vpop.f32.mrb[12].mxu1 }
 0x9de   :  { %v3271_v24 = vadd.f32 %v612_v16, %v565_v23  ;;  %v2652_v25 = vpop.f32.mrb[13].mxu1 }
 0x9df   :  { %v568_v26 = vpop.f32.mrb[14].mxu1 }
 0x9e0   :  { %v3273_v27 = vadd.f32 %v615_v19, %v568_v26  ;;  %v2653_v28 = vpop.f32.mrb[15].mxu1  ;;  %v278_v26 = vld [vmem:[%s3670_s8 + $0xc] sm:$0xf] }
 0x9e1   :  { %v916_v28 = vsel %vm527_vm7, %v278_v26, 0 }
 0x9e5   :  { %v663_v29 = vpop.f32.mrb[16].mxu1 }
 0x9e6   :  { %v664_v30 = vadd.f32 %v663_v29, %v3206_v0  ;;  %v2664_v31 = vpop.f32.mrb[17].mxu1 }
 0x9e7   :  { %v666_v32 = vpop.f32.mrb[18].mxu1 }
 0x9e8   :  { %v667_v33 = vadd.f32 %v666_v32, %v3211_v3  ;;  %v2665_v34 = vpop.f32.mrb[19].mxu1  ;;  %v670_v35 = vsel %vm330_vm6, %v664_v30, -inf }
 0x9e9   :  { %671 = vmax.xlane.f32.xlu0 %v670_v35 }
 0x9ea   :  { %v673_v36 = vsel %vm330_vm6, %v667_v33, -inf }
 0x9eb   :  { %674 = vmax.xlane.f32.xlu1 %v673_v36 }
 0x9fc   :  { %693 = vrot.lane.b32.xlu1 %v3193_v61, %s3688_s30 }
 0xa00   :  { %790 = vrot.lane.b32.xlu1 %v3193_v61, %s3687_s21  ;;  %s3703_s21 = smov 40  }
 0xa76   :  { %v672_v37 = vpop.xlane.xlu0 %671 }
 0xa77   :  { %v676_v38 = vsub.f32 %v664_v30, %v672_v37 }
 0xa78   :  { %v675_v39 = vpop.xlane.xlu1 %674 }
 0xa79   :  { %v678_v40 = vmul.f32 1.442695, %v676_v38  ;;  %v677_v41 = vsub.f32 %v667_v33, %v675_v39 }
 0xa7b   :  { %2908 = vpow2.f32 %v678_v40  ;;  %v680_v42 = vmul.f32 1.442695, %v677_v41 }
 0xa7c   :  { %v694_v43 = vpop.permute.xlu1 %693 }
 0xa7d   :  { %2910 = vpow2.f32 %v680_v42  ;;  %2667 = vmatpush3.bf16.msra.mxu0 %v694_v43 }
 0xa7e   :  { %2678 = vmatprep.subr.bf16.mxu0 %v3007_v2 }
 0xa80   :  { %v791_v57 = vpop.permute.xlu1 %790 }
 0xa85   :  { %v2909_v44 = vpop.eup %2908 }
 0xa86   :  { %v682_v45 = vsel %vm330_vm6, %v2909_v44, 0.0 }
 0xa87   :  { %v2911_v46 = vpop.eup %2910  ;;  %683 = vadd.xlane.f32.xlu0 %v682_v45 }
 0xa88   :  { %v685_v47 = vsel %vm330_vm6, %v2911_v46, 0.0 }
 0xa8b   :  { %686 = vadd.xlane.f32.xlu0 %v685_v47 }
 0xaa1   :  { %792 = vrot.lane.b32.xlu0 %v3193_v61, %s3689_s1  ;;  %s3702_s1 = smov 104  }
 0xb14   :  { %v684_v48 = vpop.xlane.xlu0 %683 }
 0xb15   :  { %2912 = vrcp.f32 %v684_v48  ;;  %v2427_v48 = vld [vmem:[%s3671_s9] ss:$0 sm:$0xff] }
 0xb18   :  { %v687_v49 = vpop.xlane.xlu0 %686 }
 0xb19   :  { %2914 = vrcp.f32 %v687_v49 }
 0xb1c   :  { %v793_v54 = vpop.permute.xlu0 %792 }
 0xb1d   :  { %v798_v56 = vsel %vm282_vm5, %v793_v54, 0 }
 0xb1f   :  { %v2913_v50 = vpop.eup %2912 }
 0xb20   :  { %v690_v52 = vmul.f32 %v2913_v50, %v2909_v44 }
 0xb23   :  { %v2915_v51 = vpop.eup %2914 }
 0xb24   :  { %v691_v53 = vmul.f32 %v2915_v51, %v2911_v46 }
 0xb26   :  { %v692_v55 = vpack.c.bf16 %v691_v53, %v690_v52 }
 0xb28   :  { %2669 = vmatmul.mubr.msk.bf16.vlgmr.msra.gmra.mrb[16].mxu0 %vm330_vm6, %v692_v55 }
 0xb29   :  { %2679 = vmatpush3.bf16.xpose.msra.mxu0 %v798_v56  ;;  %2680 = vmatprep.mubr.msk.bf16.mxu0 %vm3008_vm0, %v3007_v2 }
 0xb2a   :  { %2690 = vmatprep.subr.bf16.mxu0 %v3007_v2 }
 0xb30   :  { %2681 = vmatmul.mubr.msk.bf16.vlgmr.msra.gmra.mrb[20].mxu0 %vm282_vm5, %v791_v57 }
 0xb31   :  { %2692 = vmatprep.mubr.msk.bf16.mxu0 %vm3008_vm0, %v3007_v2  ;;  %2691 = vmatpush3.bf16.msra.mxu0 %v916_v28 }
 0xb32   :  { %2704 = vmatprep.subr.bf16.mxu0 %v3007_v2 }
 0xbfb   :  { %v733_v60 = vpop.f32.mrb[16].mxu0 }
 0xbfc   :  { %v2670_v62 = vpop.f32.mrb[17].mxu0 }
 0xbfd   :  { %v736_v63 = vpop.f32.mrb[18].mxu0 }
 0xbfe   :  { %v740_v1 = vpack.c.bf16 %v736_v63, %v733_v60  ;;  %v2671_v4 = vpop.f32.mrb[19].mxu0 }
 0xc00   :  { %2675 = vmatmul.mubr.msk.bf16.vlgmr.msra.gmra.mrb[20].mxu1 %vm282_vm5, %v740_v1 }
 0xc01   :  { %2686 = vmatprep.mubr.msk.bf16.mxu1 %vm3008_vm0, %v3007_v2 }
 0xc03   :  { %v834_v5 = vpop.f32.mrb[20].mxu0 }
 0xc04   :  { %v835_v6 = vadd.f32 %v834_v5, %v3206_v0  ;;  %v2682_v7 = vpop.f32.mrb[21].mxu0 }
 0xc05   :  { %v837_v8 = vpop.f32.mrb[22].mxu0  ;;  %v2865_v7 = vld [vmem:[%s3674_s12 + $0x8] sm:$0xff]  }
 0xc06   :  { %v838_v9 = vadd.f32 %v837_v8, %v3211_v3  ;;  %v2683_v10 = vpop.f32.mrb[23].mxu0  ;;  %v841_v11 = vsel %vm330_vm6, %v835_v6, -inf }
 0xc07   :  { %842 = vmax.xlane.f32.xlu1 %v841_v11 }
 0xc08   :  { %v844_v12 = vsel %vm330_vm6, %v838_v9, -inf }
 0xc09   :  { %845 = vmax.xlane.f32.xlu0 %v844_v12 }
 0xc94   :  { %v843_v13 = vpop.xlane.xlu1 %842 }
 0xc95   :  { %v847_v14 = vsub.f32 %v835_v6, %v843_v13  ;;  %v2864_v6 = vld [vmem:[%s3674_s12] sm:$0xff]  }
 0xc96   :  { %v846_v15 = vpop.xlane.xlu0 %845 }
 0xc97   :  { %v849_v16 = vmul.f32 1.442695, %v847_v14  ;;  %v848_v17 = vsub.f32 %v838_v9, %v846_v15 }
 0xc99   :  { %2916 = vpow2.f32 %v849_v16  ;;  %v851_v19 = vmul.f32 1.442695, %v848_v17  ;;  %v2428_v16 = vld [vmem:[%s3672_s10] ss:$0 sm:$0xff] }
 0xc9b   :  { %2918 = vpow2.f32 %v851_v19 }
 0xca3   :  { %v2917_v20 = vpop.eup %2916 }
 0xca4   :  { %v853_v22 = vsel %vm330_vm6, %v2917_v20, 0.0 }
 0xca5   :  { %v2919_v23 = vpop.eup %2918  ;;  %854 = vadd.xlane.f32.xlu0 %v853_v22  ;;  %v2429_v22 = vld [vmem:[%s3673_s11] ss:$0 sm:$0xff] }
 0xca6   :  { %v856_v25 = vsel %vm330_vm6, %v2919_v23, 0.0 }
 0xca7   :  { %857 = vadd.xlane.f32.xlu1 %v856_v25 }
 0xcbb   :  { %864 = vrot.lane.b32.xlu0 %v3193_v61, %s3686_s28 }
 0xcd3   :  { %v781_v29 = vpop.f32.mrb[20].mxu1 }
 0xcd4   :  { %v788_v30 = vadd.f32 %v781_v29, %v3271_v24  ;;  %v2676_v31 = vpop.f32.mrb[21].mxu1  ;;  %v2866_v29 = vld [vmem:[%s3676_s14] sm:$0xff]  }
 0xcd5   :  { %v784_v32 = vpop.f32.mrb[22].mxu1  ;;  %v2868_v31 = vld [vmem:[%s3676_s14 + $0x10] sm:$0xff]  }
 0xcd6   :  { %v789_v33 = vadd.f32 %v784_v32, %v3273_v27  ;;  %v2677_v34 = vpop.f32.mrb[23].mxu1  ;;  %v2869_v32 = vld [vmem:[%s3676_s14 + $0x18] sm:$0xff]  }
 0xcd7   :  { %v2871_v34 = vld [vmem:[%s3676_s14 + $0x28] sm:$0xff]  }
 0xd32   :  { %v855_v35 = vpop.xlane.xlu0 %854 }
 0xd33   :  { %2920 = vrcp.f32 %v855_v35  ;;  %v2872_v35 = vld [vmem:[%s3676_s14 + $0x30] sm:$0xff]  }
 0xd34   :  { %v858_v61 = vpop.xlane.xlu1 %857 }
 0xd35   :  { %2922 = vrcp.f32 %v858_v61  ;;  %v2873_v61 = vld [vmem:[%s3676_s14 + $0x38] sm:$0xff]  }
 0xd36   :  { %v865_v36 = vpop.permute.xlu0 %864 }
 0xd37   :  { %2685 = vmatpush3.bf16.msra.mxu1 %v865_v36  ;;  %v2430_v36 = vld [vmem:[%s3675_s13] ss:$0 sm:$0xff] }
 0xd38   :  { %2696 = vmatprep.subr.bf16.mxu1 %v3007_v2 }
 0xd3d   :  { %v2921_v37 = vpop.eup %2920 }
 0xd3e   :  { %v861_v39 = vmul.f32 %v2921_v37, %v2917_v20 }
 0xd3f   :  { %v2923_v38 = vpop.eup %2922 }
 0xd40   :  { %v862_v40 = vmul.f32 %v2923_v38, %v2919_v23 }
 0xd42   :  { %v863_v41 = vpack.c.bf16 %v862_v40, %v861_v39 }
 0xd44   :  { %2687 = vmatmul.mubr.msk.bf16.vlgmr.msra.gmra.mrb[24].mxu1 %vm330_vm6, %v863_v41 }
 0xd45   :  { %2700 = vmatprep.mubr.msk.bf16.mxu1 %vm3008_vm0, %v3007_v2  ;;  %2697 = vmatpush3.bf16.msra.mxu1 %v2864_v6 }
 0xd46   :  { %2698 = vmatprep.subr.bf16.mxu1 %v3007_v2 }
 0xd49   :  { %2699 = vmatpush3.bf16.msra.mxu1 %v2865_v7 }
 0xd4a   :  { %2724 = vmatprep.subr.bf16.mxu1 %v3007_v2 }
 0xe17   :  { %v904_v24 = vpop.f32.mrb[24].mxu1 }
 0xe18   :  { %v2688_v27 = vpop.f32.mrb[25].mxu1 }
 0xe19   :  { %v907_v42 = vpop.f32.mrb[26].mxu1 }
 0xe1a   :  { %v911_v43 = vpack.c.bf16 %v907_v42, %v904_v24  ;;  %v2689_v44 = vpop.f32.mrb[27].mxu1 }
 0xe1c   :  { %2693 = vmatmul.mubr.msk.bf16.vlgmr.msra.gmra.mrb[24].mxu0 %vm282_vm5, %v911_v43 }
 0xe1d   :  { %2720 = vmatprep.mubr.msk.bf16.mxu0 %vm3008_vm0, %v3007_v2  ;;  %2705 = vmatpush3.bf16.msra.mxu0 %v2866_v29 }
 0xe1e   :  { %2706 = vmatprep.subr.bf16.mxu0 %v3007_v2 }
 0xeef   :  { %v952_v45 = vpop.f32.mrb[24].mxu0 }
 0xef0   :  { %v959_v46 = vadd.f32 %v952_v45, %v788_v30  ;;  %v2694_v47 = vpop.f32.mrb[25].mxu0  ;;  %v2867_v30 = vld [vmem:[%s3676_s14 + $0x8] sm:$0xff]  }
 0xef1   :  { %v955_v49 = vpop.f32.mrb[26].mxu0  ;;  %2707 = vmatpush3.bf16.msra.mxu0 %v2867_v30 }
 0xef2   :  { %v961_v50 = vadd.f32 %v959_v46, %v3161_v18  ;;  %v960_v51 = vadd.f32 %v955_v49, %v789_v33  ;;  %v2695_v52 = vpop.f32.mrb[27].mxu0  ;;  %2708 = vmatprep.subr.bf16.mxu0 %v3007_v2  ;;  %v2870_v33 = vld [vmem:[%s3676_s14 + $0x20] sm:$0xff]  }
 0xef4   :  { %v3330_v53 = vadd.f32 %v2427_v48, %v961_v50  ;;  %v962_v54 = vadd.f32 %v960_v51, %v3163_v21 }
 0xef5   :  { %2709 = vmatpush3.bf16.msra.mxu0 %v2868_v31 }
 0xef6   :  { %v3333_v55 = vadd.f32 %v2427_v48, %v962_v54  ;;  %v974_v56 = vsel %vm162_vm4, %v3330_v53, 0.0  ;;  %2710 = vmatprep.subr.bf16.mxu0 %v3007_v2 }
 0xef7   :  { %975 = vadd.xlane.f32.xlu1 %v974_v56 }
 0xef8   :  { %v977_v57 = vsel %vm162_vm4, %v3333_v55, 0.0 }
 0xef9   :  { %2711 = vmatpush3.bf16.msra.mxu0 %v2869_v32 }
 0xefa   :  { %2712 = vmatprep.subr.bf16.mxu0 %v3007_v2 }
 0xefb   :  { %978 = vadd.xlane.f32.xlu1 %v977_v57 }
 0xefd   :  { %2713 = vmatpush3.bf16.msra.mxu0 %v2870_v33  ;;  %v2445_v33 = vld [vmem:[%s3666_s4 + $0x1] ss:$0 sm:$0xff]  ;;  %s3699_s4 = smov 112  }
 0xefe   :  { %2714 = vmatprep.subr.bf16.mxu0 %v3007_v2 }
 0xf01   :  { %2715 = vmatpush3.bf16.msra.mxu0 %v2871_v34 }
 0xf02   :  { %2716 = vmatprep.subr.bf16.mxu0 %v3007_v2 }
 0xf05   :  { %2717 = vmatpush3.bf16.msra.mxu0 %v2872_v35 }
 0xf06   :  { %2718 = vmatprep.subr.bf16.mxu0 %v3007_v2 }
 0xf09   :  { %2719 = vmatpush3.bf16.msra.mxu0 %v2873_v61 }
 0xf0a   :  { %2750 = vmatprep.subr.bf16.mxu0 %v3007_v2 }
 0xf84   :  { %v976_v58 = vpop.xlane.xlu1 %975 }
 0xf85   :  { %v980_v59 = vmul.f32 0.03125, %v976_v58 }
 0xf87   :  { %v982_v18 = vsub.f32 %v3330_v53, %v980_v59 }
 0xf88   :  { %v979_v60 = vpop.xlane.xlu1 %978 }
 0xf89   :  { %v981_v62 = vmul.f32 0.03125, %v979_v60  ;;  %v984_v63 = vmul.f32 %v982_v18, %v982_v18 }
 0xf8b   :  { %v983_v1 = vsub.f32 %v3333_v55, %v981_v62  ;;  %v986_v21 = vsel %vm162_vm4, %v984_v63, 0.0  ;;  %v2434_v62 = vld [vmem:[%s3677_s15] ss:$0 sm:$0xff] }
 0xf8c   :  { %987 = vadd.xlane.f32.xlu1 %v986_v21 }
 0xf8d   :  { %v985_v4 = vmul.f32 %v983_v1, %v983_v1 }
 0xf8f   :  { %v989_v5 = vsel %vm162_vm4, %v985_v4, 0.0 }
 0xf90   :  { %990 = vadd.xlane.f32.xlu1 %v989_v5 }
0x1019   :  { %v988_v8 = vpop.xlane.xlu1 %987 }
0x101a   :  { %v992_v9 = vmul.f32 0.03125, %v988_v8 }
0x101c   :  { %v994_v10 = vadd.f32 1e-05, %v992_v9 }
0x101d   :  { %v991_v11 = vpop.xlane.xlu1 %990 }
0x101e   :  { %2924 = vrsqrt.f32 %v994_v10  ;;  %v993_v12 = vmul.f32 0.03125, %v991_v11 }
0x1020   :  { %v995_v13 = vadd.f32 1e-05, %v993_v12 }
0x1022   :  { %2926 = vrsqrt.f32 %v995_v13 }
0x1028   :  { %v2925_v14 = vpop.eup %2924 }
0x1029   :  { %v998_v15 = vmul.f32 %v2925_v14, %v982_v18 }
0x102b   :  { %v1006_v19 = vmul.f32 %v2428_v16, %v998_v15 }
0x102c   :  { %v2927_v17 = vpop.eup %2926 }
0x102d   :  { %v999_v20 = vmul.f32 %v2927_v17, %v983_v1  ;;  %v1014_v25 = vadd.f32 %v2429_v22, %v1006_v19 }
0x102f   :  { %v1007_v23 = vmul.f32 %v2428_v16, %v999_v20  ;;  %v2874_v20 = vld [vmem:[%s3668_s6 + $0x10] sm:$0xff]  }
0x1031   :  { %v1015_v26 = vadd.f32 %v2429_v22, %v1007_v23  ;;  %v2875_v22 = vld [vmem:[%s3668_s6 + $0x18] sm:$0xff]  }
0x1033   :  { %v1016_v28 = vpack.c.bf16 %v1015_v26, %v1014_v25 }
0x1035   :  { %2701 = vmatmul.mubr.msk.bf16.vlgmr.msra.gmra.mrb[28].mxu1 %vm162_vm4, %v1016_v28 }
0x1036   :  { %2728 = vmatprep.mubr.msk.bf16.mxu1 %vm3008_vm0, %v3007_v2  ;;  %2725 = vmatpush3.bf16.msra.mxu1 %v2874_v20 }
0x1037   :  { %2726 = vmatprep.subr.bf16.mxu1 %v3007_v2 }
0x103a   :  { %2727 = vmatpush3.bf16.msra.mxu1 %v2875_v22 }
0x103b   :  { %2732 = vmatprep.subr.bf16.mxu1 %v3007_v2 }
0x1108   :  { %v1077_v37 = vpop.f32.mrb[28].mxu1 }
0x1109   :  { %v1078_v38 = vadd.f32 %v2430_v36, %v1077_v37  ;;  %v2702_v39 = vpop.f32.mrb[29].mxu1 }
0x110a   :  { %v1080_v40 = vpop.f32.mrb[30].mxu1 }
0x110b   :  { %v1086_v41 = vmul.f32 0.044715, %v1078_v38  ;;  %v1081_v24 = vadd.f32 %v2430_v36, %v1080_v40  ;;  %v2703_v27 = vpop.f32.mrb[31].mxu1  ;;  %v1084_v56 = vmul.f32 0.5, %v1078_v38  ;;  %v2446_v36 = vld [vmem:[%s3667_s5 + $0x1] ss:$0 sm:$0xff] }
0x110d   :  { %v1088_v42 = vmul.f32 %v1086_v41, %v1078_v38  ;;  %v1087_v43 = vmul.f32 0.044715, %v1081_v24  ;;  %v1085_v57 = vmul.f32 0.5, %v1081_v24  ;;  %v2452_v41 = vld [vmem:[%s3669_s7 + $0x1] ss:$0 sm:$0xff] }
0x110f   :  { %v1090_v44 = vmul.f32 %v1088_v42, %v1078_v38  ;;  %v1089_v45 = vmul.f32 %v1087_v43, %v1081_v24 }
0x1111   :  { %v1092_v46 = vadd.f32 %v1090_v44, %v1078_v38  ;;  %v1091_v47 = vmul.f32 %v1089_v45, %v1081_v24 }
0x1113   :  { %v1094_v48 = vmul.f32 0.7978846, %v1092_v46  ;;  %v1093_v49 = vadd.f32 %v1091_v47, %v1081_v24 }
0x1115   :  { %2928 = vtanh.f32 %v1094_v48  ;;  %v1095_v50 = vmul.f32 0.7978846, %v1093_v49 }
0x1117   :  { %2930 = vtanh.f32 %v1095_v50 }
0x111f   :  { %v2929_v51 = vpop.eup %2928 }
0x1120   :  { %v1098_v52 = vadd.f32 1.0, %v2929_v51 }
0x1121   :  { %v2931_v54 = vpop.eup %2930 }
0x1122   :  { %v1099_v58 = vadd.f32 1.0, %v2931_v54  ;;  %v1100_v59 = vmul.f32 %v1098_v52, %v1084_v56 }
0x1124   :  { %v1101_v18 = vmul.f32 %v1099_v58, %v1085_v57 }
0x1126   :  { %v1102_v60 = vpack.c.bf16 %v1101_v18, %v1100_v59 }
0x1128   :  { %2721 = vmatmul.mubr.bf16.vlgmr.msra.gmra.mrb[28].mxu0 %v1102_v60 }
0x1129   :  { %2752 = vmatprep.mubr.msk.bf16.mxu0 %vm3008_vm0, %v3007_v2 }
0x11fb   :  { %v1208_v63 = vpop.f32.mrb[28].mxu0 }
0x11fc   :  { %v1209_v1 = vadd.f32 %v2434_v62, %v1208_v63  ;;  %v2722_v21 = vpop.f32.mrb[29].mxu0 }
0x11fd   :  { %v1211_v4 = vpop.f32.mrb[30].mxu0 }
0x11fe   :  { %v3401_v5 = vadd.f32 %v1209_v1, %v3330_v53  ;;  %v1212_v6 = vadd.f32 %v2434_v62, %v1211_v4  ;;  %v2723_v7 = vpop.f32.mrb[31].mxu0 }
0x1200   :  { %v3404_v8 = vadd.f32 %v1212_v6, %v3333_v55  ;;  %v1221_v9 = vsel %vm162_vm4, %v3401_v5, 0.0 }
0x1201   :  { %1222 = vadd.xlane.f32.xlu1 %v1221_v9 }
0x1202   :  { %v1224_v10 = vsel %vm162_vm4, %v3404_v8, 0.0 }
0x1203   :  { %1225 = vadd.xlane.f32.xlu0 %v1224_v10 }
0x128e   :  { %v1223_v11 = vpop.xlane.xlu1 %1222 }
0x128f   :  { %v1227_v12 = vmul.f32 0.03125, %v1223_v11 }
0x1290   :  { %v1226_v13 = vpop.xlane.xlu0 %1225 }
0x1291   :  { %v1229_v14 = vsub.f32 %v3401_v5, %v1227_v12  ;;  %v1228_v53 = vmul.f32 0.03125, %v1226_v13 }
0x1293   :  { %v1230_v15 = vsub.f32 %v3404_v8, %v1228_v53  ;;  %v1231_v16 = vmul.f32 %v1229_v14, %v1229_v14 }
0x1295   :  { %v1233_v55 = vsel %vm162_vm4, %v1231_v16, 0.0  ;;  %v1232_v17 = vmul.f32 %v1230_v15, %v1230_v15 }
0x1296   :  { %1234 = vadd.xlane.f32.xlu1 %v1233_v55 }
0x1297   :  { %v1236_v19 = vsel %vm162_vm4, %v1232_v17, 0.0 }
0x129a   :  { %1237 = vadd.xlane.f32.xlu1 %v1236_v19 }
0x1323   :  { %v1235_v23 = vpop.xlane.xlu1 %1234 }
0x1324   :  { %v1239_v25 = vmul.f32 0.03125, %v1235_v23 }
0x1326   :  { %v1241_v26 = vadd.f32 1e-05, %v1239_v25 }
0x1327   :  { %v1238_v28 = vpop.xlane.xlu1 %1237 }
0x1328   :  { %2932 = vrsqrt.f32 %v1241_v26  ;;  %v1240_v29 = vmul.f32 0.03125, %v1238_v28 }
0x132a   :  { %v1242_v30 = vadd.f32 1e-05, %v1240_v29 }
0x132c   :  { %2934 = vrsqrt.f32 %v1242_v30 }
0x1332   :  { %v2933_v31 = vpop.eup %2932 }
0x1333   :  { %v1245_v32 = vmul.f32 %v2933_v31, %v1229_v14 }
0x1335   :  { %v1253_v35 = vmul.f32 %v2445_v33, %v1245_v32 }
0x1336   :  { %v2935_v34 = vpop.eup %2934 }
0x1337   :  { %v1246_v61 = vmul.f32 %v2935_v34, %v1230_v15  ;;  %v1261_v38 = vadd.f32 %v2446_v36, %v1253_v35 }
0x1339   :  { %v1254_v37 = vmul.f32 %v2445_v33, %v1246_v61 }
0x133b   :  { %v1262_v39 = vadd.f32 %v2446_v36, %v1254_v37 }
0x133d   :  { %v1263_v40 = vpack.c.bf16 %v1262_v39, %v1261_v38 }
0x133f   :  { %2729 = vmatmul.mubr.msk.bf16.vlgmr.msra.gmra.mrb[32].mxu1 %vm162_vm4, %v1263_v40 }
0x1340   :  { %2734 = vmatprep.mubr.msk.bf16.mxu1 %vm3008_vm0, %v3007_v2 }
0x1412   :  { %v1326_v24 = vpop.f32.mrb[32].mxu1 }
0x1413   :  { %v2730_v27 = vpop.f32.mrb[33].mxu1  ;;  %v1327_v43 = vadd.f32 %v2452_v41, %v1326_v24  ;;  %v2457_v24 = vld [vmem:[%s3670_s8 + $0x14] sm:$0xf] }
0x1414   :  { %v1329_v42 = vpop.f32.mrb[34].mxu1  ;;  %v1586_v27 = vsel %vm527_vm7, %v2457_v24, 0 }
0x1415   :  { %v1330_v44 = vadd.f32 %v2452_v41, %v1329_v42  ;;  %v2731_v45 = vpop.f32.mrb[35].mxu1 }
0x1417   :  { %v3434_v46 = vpack.c.bf16 %v1330_v44, %v1327_v43 }
0x1419   :  { %1340 = vrot.lane.b32.xlu1 %v3434_v46, %s3009_s29 }
0x148b   :  { %v1341_v47 = vpop.permute.xlu1 %1340 }
0x148c   :  { %v1346_v48 = vsel %vm282_vm5, %v1341_v47, 0 }
0x148d   :  { %2733 = vmatpush3.bf16.xpose.msra.mxu1 %v1346_v48  ;;  %v2456_v48 = vld [vmem:[%s3670_s8 + $0x10] sm:$0xf] }
0x148e   :  { %2738 = vmatprep.subr.bf16.mxu1 %v3007_v2 }
0x1494   :  { %2735 = vmatmul.mubr.msk.bf16.vlgmr.msra.gmra.mrb[36].mxu1 %vm282_vm5, %v3434_v46 }
0x1495   :  { %2740 = vmatprep.mubr.msk.bf16.mxu1 %vm3008_vm0, %v3007_v2 }
0x1567   :  { %v1382_v49 = vpop.f32.mrb[36].mxu1 }
0x1568   :  { %v1383_v50 = vadd.f32 %v1382_v49, %v3206_v0  ;;  %v2736_v51 = vpop.f32.mrb[37].mxu1 }
0x1569   :  { %v1385_v52 = vpop.f32.mrb[38].mxu1 }
0x156a   :  { %v1386_v54 = vadd.f32 %v1385_v52, %v3211_v3  ;;  %v2737_v56 = vpop.f32.mrb[39].mxu1  ;;  %v1389_v57 = vsel %vm330_vm6, %v1383_v50, -inf  ;;  %v1633_v52 = vsel %vm527_vm7, %v2456_v48, 0 }
0x156b   :  { %1390 = vmax.xlane.f32.xlu1 %v1389_v57 }
0x156c   :  { %v1392_v58 = vsel %vm330_vm6, %v1386_v54, -inf }
0x156d   :  { %1393 = vmax.xlane.f32.xlu0 %v1392_v58 }
0x157c   :  { %1462 = vrot.lane.b32.xlu1 %v3434_v46, %s3010_s22 }
0x15f8   :  { %v1391_v59 = vpop.xlane.xlu1 %1390 }
0x15f9   :  { %v1395_v18 = vsub.f32 %v1383_v50, %v1391_v59 }
0x15fa   :  { %v1394_v60 = vpop.xlane.xlu0 %1393 }
0x15fb   :  { %v1397_v62 = vmul.f32 1.442695, %v1395_v18  ;;  %v1396_v63 = vsub.f32 %v1386_v54, %v1394_v60 }
0x15fc   :  { %v1463_v15 = vpop.permute.xlu1 %1462 }
0x15fd   :  { %2936 = vpow2.f32 %v1397_v62  ;;  %v1399_v1 = vmul.f32 1.442695, %v1396_v63  ;;  %v1468_v55 = vsel %vm282_vm5, %v1463_v15, 0 }
0x15ff   :  { %2938 = vpow2.f32 %v1399_v1 }
0x1607   :  { %v2937_v21 = vpop.eup %2936 }
0x1608   :  { %v1401_v4 = vsel %vm330_vm6, %v2937_v21, 0.0 }
0x1609   :  { %v2939_v6 = vpop.eup %2938  ;;  %1402 = vadd.xlane.f32.xlu0 %v1401_v4 }
0x160a   :  { %v1404_v7 = vsel %vm330_vm6, %v2939_v6, 0.0 }
0x160d   :  { %1405 = vadd.xlane.f32.xlu0 %v1404_v7 }
0x1623   :  { %1412 = vrot.lane.b32.xlu0 %v3434_v46, %s3011_s2  ;;  %s3020_s2 = smov [#allocation2]  }
0x1627   :  { %1460 = vrot.lane.b32.xlu0 %v3434_v46, %s3012_s23  ;;  %s2393_s23 = sshll.u32 %s3020_s2, 4  ;;  %s2394_s23 = int_to_ptr.vmem [resolvable:$true] %s2393_s23 }
0x1628   :  { %p2987_p1 = scmp.lt.s32.totalorder %s2394_s23, %s2394_s23 }
0x1696   :  { %v1403_v9 = vpop.xlane.xlu0 %1402 }
0x1697   :  { %2940 = vrcp.f32 %v1403_v9 }
0x169a   :  { %v1406_v10 = vpop.xlane.xlu0 %1405 }
0x169b   :  { %2942 = vrcp.f32 %v1406_v10 }
0x169e   :  { %v1413_v11 = vpop.permute.xlu0 %1412 }
0x169f   :  { %2739 = vmatpush3.bf16.msra.mxu1 %v1413_v11 }
0x16a0   :  { %2744 = vmatprep.subr.bf16.mxu1 %v3007_v2 }
0x16a1   :  { %v2941_v12 = vpop.eup %2940 }
0x16a2   :  { %v1409_v14 = vmul.f32 %v2941_v12, %v2937_v21  ;;  %v1461_v17 = vpop.permute.xlu0 %1460 }
0x16a5   :  { %v2943_v13 = vpop.eup %2942 }
0x16a6   :  { %v1410_v53 = vmul.f32 %v2943_v13, %v2939_v6 }
0x16a8   :  { %v1411_v16 = vpack.c.bf16 %v1410_v53, %v1409_v14  ;;  %v2980_v14 = vld [vmem:[%s3698_s20] sm:$0xff] }
0x16aa   :  { %2741 = vmatmul.mubr.msk.bf16.vlgmr.msra.gmra.mrb[40].mxu1 %vm330_vm6, %v1411_v16 }
0x16ab   :  { %2745 = vmatpush3.bf16.xpose.msra.mxu1 %v1468_v55  ;;  %2746 = vmatprep.mubr.msk.bf16.mxu1 %vm3008_vm0, %v3007_v2  ;;  %v2981_v55 = vld [vmem:[%s3698_s20 + $0x8] sm:$0xff]  ;;  %s3700_s20 = smov 72  }
0x16ac   :  { %2756 = vmatprep.subr.bf16.mxu1 %v3007_v2 }
0x16b2   :  { %2747 = vmatmul.mubr.msk.bf16.vlgmr.msra.gmra.mrb[44].mxu1 %vm282_vm5, %v1461_v17 }
0x16b3   :  { %2758 = vmatprep.mubr.msk.bf16.mxu1 %vm3008_vm0, %v3007_v2  ;;  %2757 = vmatpush3.bf16.msra.mxu1 %v1586_v27  ;;  %v2458_v27 = vld [vmem:[%s3670_s8 + $0x18] sm:$0xf] }
0x16b4   :  { %2768 = vmatprep.subr.bf16.mxu1 %v3007_v2 }
0x177d   :  { %v1452_v19 = vpop.f32.mrb[40].mxu1 }
0x177e   :  { %v2742_v20 = vpop.f32.mrb[41].mxu1 }
0x177f   :  { %v1455_v22 = vpop.f32.mrb[42].mxu1 }
0x1780   :  { %v1459_v23 = vpack.c.bf16 %v1455_v22, %v1452_v19  ;;  %v2743_v25 = vpop.f32.mrb[43].mxu1 }
0x1785   :  { %v1504_v26 = vpop.f32.mrb[44].mxu1 }
0x1786   :  { %v1505_v28 = vadd.f32 %v1504_v26, %v3206_v0  ;;  %v2748_v29 = vpop.f32.mrb[45].mxu1 }
0x1787   :  { %v1507_v30 = vpop.f32.mrb[46].mxu1 }
0x1788   :  { %v1508_v31 = vadd.f32 %v1507_v30, %v3211_v3  ;;  %v2749_v32 = vpop.f32.mrb[47].mxu1  ;;  %v1511_v33 = vsel %vm330_vm6, %v1505_v28, -inf }
0x1789   :  { %1512 = vmax.xlane.f32.xlu0 %v1511_v33 }
0x178a   :  { %v1514_v34 = vsel %vm330_vm6, %v1508_v31, -inf }
0x178b   :  { %1515 = vmax.xlane.f32.xlu1 %v1514_v34 }
0x179c   :  { %1678 = vrot.lane.b32.xlu1 %v3434_v46, %s3013_s24 }
0x1816   :  { %v1513_v35 = vpop.xlane.xlu0 %1512 }
0x1817   :  { %v1517_v61 = vsub.f32 %v1505_v28, %v1513_v35 }
0x1818   :  { %v1516_v36 = vpop.xlane.xlu1 %1515 }
0x1819   :  { %v1519_v37 = vmul.f32 1.442695, %v1517_v61  ;;  %v1518_v38 = vsub.f32 %v1508_v31, %v1516_v36 }
0x181b   :  { %2944 = vpow2.f32 %v1519_v37  ;;  %v1521_v0 = vmul.f32 1.442695, %v1518_v38 }
0x181c   :  { %v1679_v57 = vpop.permute.xlu1 %1678 }
0x181d   :  { %2946 = vpow2.f32 %v1521_v0  ;;  %v1684_v60 = vsel %vm282_vm5, %v1679_v57, 0 }
0x1825   :  { %v2945_v39 = vpop.eup %2944 }
0x1826   :  { %v1523_v3 = vsel %vm330_vm6, %v2945_v39, 0.0 }
0x1827   :  { %v2947_v40 = vpop.eup %2946  ;;  %1524 = vadd.xlane.f32.xlu0 %v1523_v3 }
0x1828   :  { %v1526_v41 = vsel %vm330_vm6, %v2947_v40, 0.0 }
0x182b   :  { %1527 = vadd.xlane.f32.xlu0 %v1526_v41 }
0x1841   :  { %1534 = vrot.lane.b32.xlu0 %v3434_v46, %s3015_s3 }
0x1845   :  { %1676 = vrot.lane.b32.xlu0 %v3434_v46, %s3699_s4 }
0x18b4   :  { %v1525_v42 = vpop.xlane.xlu0 %1524 }
0x18b5   :  { %2948 = vrcp.f32 %v1525_v42  ;;  %v1802_v42 = vsel %vm527_vm7, %v2458_v27, 0 }
0x18b8   :  { %v1528_v43 = vpop.xlane.xlu0 %1527 }
0x18b9   :  { %2950 = vrcp.f32 %v1528_v43 }
0x18bc   :  { %v1535_v44 = vpop.permute.xlu0 %1534 }
0x18bd   :  { %2751 = vmatpush3.bf16.msra.mxu0 %v1535_v44 }
0x18be   :  { %2762 = vmatprep.subr.bf16.mxu0 %v3007_v2 }
0x18bf   :  { %v2949_v45 = vpop.eup %2948 }
0x18c0   :  { %v1531_v49 = vmul.f32 %v2949_v45, %v2945_v39  ;;  %v1677_v4 = vpop.permute.xlu0 %1676 }
0x18c3   :  { %v2951_v47 = vpop.eup %2950 }
0x18c4   :  { %v1532_v50 = vmul.f32 %v2951_v47, %v2947_v40 }
0x18c6   :  { %v1533_v51 = vpack.c.bf16 %v1532_v50, %v1531_v49 }
0x18c8   :  { %2753 = vmatmul.mubr.msk.bf16.vlgmr.msra.gmra.mrb[32].mxu0 %vm330_vm6, %v1533_v51 }
0x18c9   :  { %2763 = vmatpush3.bf16.msra.mxu0 %v1633_v52  ;;  %2764 = vmatprep.mubr.msk.bf16.mxu0 %vm3008_vm0, %v3007_v2 }
0x18ca   :  { %2774 = vmatprep.subr.bf16.mxu0 %v3007_v2 }
0x18d0   :  { %2765 = vmatmul.mubr.msk.bf16.vlgmr.msra.gmra.mrb[36].mxu0 %vm282_vm5, %v1459_v23 }
0x18d1   :  { %2776 = vmatprep.mubr.msk.bf16.mxu0 %vm3008_vm0, %v3007_v2 }
0x199b   :  { %v1574_v54 = vpop.f32.mrb[32].mxu0 }
0x199c   :  { %v2754_v56 = vpop.f32.mrb[33].mxu0 }
0x199d   :  { %v1577_v58 = vpop.f32.mrb[34].mxu0 }
0x199e   :  { %v1581_v59 = vpack.c.bf16 %v1577_v58, %v1574_v54  ;;  %v2755_v18 = vpop.f32.mrb[35].mxu0 }
0x19a0   :  { %2759 = vmatmul.mubr.msk.bf16.vlgmr.msra.gmra.mrb[48].mxu1 %vm282_vm5, %v1581_v59 }
0x19a1   :  { %2769 = vmatpush3.bf16.xpose.msra.mxu1 %v1684_v60  ;;  %2770 = vmatprep.mubr.msk.bf16.mxu1 %vm3008_vm0, %v3007_v2 }
0x19a2   :  { %2780 = vmatprep.subr.bf16.mxu1 %v3007_v2 }
0x19a3   :  { %v1669_v62 = vpop.f32.mrb[36].mxu0 }
0x19a4   :  { %v2766_v63 = vpop.f32.mrb[37].mxu0 }
0x19a5   :  { %v1672_v1 = vpop.f32.mrb[38].mxu0 }
0x19a6   :  { %v2767_v21 = vpop.f32.mrb[39].mxu0 }
0x19a8   :  { %2771 = vmatmul.mubr.msk.bf16.vlgmr.msra.gmra.mrb[52].mxu1 %vm282_vm5, %v1677_v4 }
0x19a9   :  { %2782 = vmatprep.mubr.msk.bf16.mxu1 %vm3008_vm0, %v3007_v2  ;;  %2781 = vmatpush3.bf16.msra.mxu1 %v1802_v42 }
0x19aa   :  { %2792 = vmatprep.subr.bf16.mxu1 %v3007_v2 }
0x1a73   :  { %v1622_v6 = vpop.f32.mrb[48].mxu1 }
0x1a74   :  { %v3502_v7 = vadd.f32 %v1669_v62, %v1622_v6  ;;  %v2760_v9 = vpop.f32.mrb[49].mxu1 }
0x1a75   :  { %v1625_v10 = vpop.f32.mrb[50].mxu1 }
0x1a76   :  { %v3504_v11 = vadd.f32 %v1672_v1, %v1625_v10  ;;  %v2761_v12 = vpop.f32.mrb[51].mxu1 }
0x1a7b   :  { %v1720_v13 = vpop.f32.mrb[52].mxu1 }
0x1a7c   :  { %v1721_v53 = vadd.f32 %v2980_v14, %v1720_v13  ;;  %v2772_v15 = vpop.f32.mrb[53].mxu1 }
0x1a7d   :  { %v1723_v16 = vpop.f32.mrb[54].mxu1 }
0x1a7e   :  { %v1724_v17 = vadd.f32 %v2981_v55, %v1723_v16  ;;  %v2773_v19 = vpop.f32.mrb[55].mxu1  ;;  %v1727_v20 = vsel %vm330_vm6, %v1721_v53, -inf }
0x1a7f   :  { %1728 = vmax.xlane.f32.xlu1 %v1727_v20 }
0x1a80   :  { %v1730_v22 = vsel %vm330_vm6, %v1724_v17, -inf }
0x1a81   :  { %1731 = vmax.xlane.f32.xlu0 %v1730_v22 }
0x1b0c   :  { %v1729_v23 = vpop.xlane.xlu1 %1728 }
0x1b0d   :  { %v1733_v25 = vsub.f32 %v1721_v53, %v1729_v23 }
0x1b0e   :  { %v1732_v26 = vpop.xlane.xlu0 %1731 }
0x1b0f   :  { %v1735_v28 = vmul.f32 1.442695, %v1733_v25  ;;  %v1734_v29 = vsub.f32 %v1724_v17, %v1732_v26 }
0x1b11   :  { %2952 = vpow2.f32 %v1735_v28  ;;  %v1737_v30 = vmul.f32 1.442695, %v1734_v29 }
0x1b13   :  { %2954 = vpow2.f32 %v1737_v30 }
0x1b1b   :  { %v2953_v31 = vpop.eup %2952 }
0x1b1c   :  { %v1739_v32 = vsel %vm330_vm6, %v2953_v31, 0.0 }
0x1b1d   :  { %v2955_v33 = vpop.eup %2954  ;;  %1740 = vadd.xlane.f32.xlu0 %v1739_v32 }
0x1b1e   :  { %v1742_v34 = vsel %vm330_vm6, %v2955_v33, 0.0 }
0x1b1f   :  { %1743 = vadd.xlane.f32.xlu1 %v1742_v34  ;;  %v2473_v34 = vld [vmem:[%s3671_s9 + $0x1] ss:$0 sm:$0xff] }
0x1b30   :  { %1849 = vrot.lane.b32.xlu1 %v3434_v46, %s3700_s20 }
0x1b33   :  { %1750 = vrot.lane.b32.xlu0 %v3434_v46, %s3701_s0 }
0x1b34   :  { %1847 = vrot.lane.b32.xlu1 %v3434_v46, %s3702_s1 }
0x1baa   :  { %v1741_v35 = vpop.xlane.xlu0 %1740 }
0x1bab   :  { %2956 = vrcp.f32 %v1741_v35 }
0x1bac   :  { %v1744_v61 = vpop.xlane.xlu1 %1743 }
0x1bad   :  { %2958 = vrcp.f32 %v1744_v61 }
0x1bae   :  { %v1751_v36 = vpop.permute.xlu0 %1750 }
0x1baf   :  { %2775 = vmatpush3.bf16.msra.mxu0 %v1751_v36 }
0x1bb0   :  { %2786 = vmatprep.subr.bf16.mxu0 %v3007_v2  ;;  %v1850_v3 = vpop.permute.xlu1 %1849 }
0x1bb1   :  { %v1855_v41 = vsel %vm282_vm5, %v1850_v3, 0 }
0x1bb4   :  { %v1848_v24 = vpop.permute.xlu1 %1847 }
0x1bb5   :  { %v2957_v37 = vpop.eup %2956 }
0x1bb6   :  { %v1747_v0 = vmul.f32 %v2957_v37, %v2953_v31 }
0x1bb7   :  { %v2959_v38 = vpop.eup %2958 }
0x1bb8   :  { %v1748_v39 = vmul.f32 %v2959_v38, %v2955_v33 }
0x1bba   :  { %v1749_v40 = vpack.c.bf16 %v1748_v39, %v1747_v0 }
0x1bbc   :  { %2777 = vmatmul.mubr.msk.bf16.vlgmr.msra.gmra.mrb[40].mxu0 %vm330_vm6, %v1749_v40 }
0x1bbd   :  { %2787 = vmatpush3.bf16.xpose.msra.mxu0 %v1855_v41  ;;  %2788 = vmatprep.mubr.msk.bf16.mxu0 %vm3008_vm0, %v3007_v2 }
0x1bbe   :  { %2798 = vmatprep.subr.bf16.mxu0 %v3007_v2 }
0x1bc4   :  { %2789 = vmatmul.mubr.msk.bf16.vlgmr.msra.gmra.mrb[44].mxu0 %vm282_vm5, %v1848_v24 }
0x1bc5   :  { %2800 = vmatprep.mubr.msk.bf16.mxu0 %vm3008_vm0, %v3007_v2 }
0x1c8f   :  { %v1790_v43 = vpop.f32.mrb[40].mxu0 }
0x1c90   :  { %v2778_v44 = vpop.f32.mrb[41].mxu0 }
0x1c91   :  { %v1793_v45 = vpop.f32.mrb[42].mxu0 }
0x1c92   :  { %v1797_v47 = vpack.c.bf16 %v1793_v45, %v1790_v43  ;;  %v2779_v48 = vpop.f32.mrb[43].mxu0 }
0x1c93   :  { %v2876_v48 = vld [vmem:[%s3674_s12 + $0x10] sm:$0xff]  }
0x1c94   :  { %2783 = vmatmul.mubr.msk.bf16.vlgmr.msra.gmra.mrb[56].mxu1 %vm282_vm5, %v1797_v47 }
0x1c95   :  { %2794 = vmatprep.mubr.msk.bf16.mxu1 %vm3008_vm0, %v3007_v2 }
0x1c97   :  { %v1891_v49 = vpop.f32.mrb[44].mxu0 }
0x1c98   :  { %v1892_v50 = vadd.f32 %v2980_v14, %v1891_v49  ;;  %v2790_v51 = vpop.f32.mrb[45].mxu0  ;;  %v2877_v49 = vld [vmem:[%s3674_s12 + $0x18] sm:$0xff]  }
0x1c99   :  { %v1894_v52 = vpop.f32.mrb[46].mxu0 }
0x1c9a   :  { %v1895_v54 = vadd.f32 %v2981_v55, %v1894_v52  ;;  %v2791_v56 = vpop.f32.mrb[47].mxu0  ;;  %v1898_v57 = vsel %vm330_vm6, %v1892_v50, -inf }
0x1c9b   :  { %1899 = vmax.xlane.f32.xlu0 %v1898_v57 }
0x1c9c   :  { %v1901_v58 = vsel %vm330_vm6, %v1895_v54, -inf }
0x1c9d   :  { %1902 = vmax.xlane.f32.xlu1 %v1901_v58 }
0x1cae   :  { %1921 = vrot.lane.b32.xlu1 %v3434_v46, %s3703_s21  ;;  %v2459_v46 = vld [vmem:[%s3670_s8 + $0x1c] sm:$0xf] }
0x1caf   :  { %v1973_v12 = vsel %vm527_vm7, %v2459_v46, 0  ;;  %v2879_v46 = vld [vmem:[%s3676_s14 + $0x48] sm:$0xff]  }
0x1cb0   :  { %2799 = vmatpush3.bf16.msra.mxu0 %v1973_v12  ;;  %v2880_v12 = vld [vmem:[%s3676_s14 + $0x50] sm:$0xff]  }
0x1cb1   :  { %2812 = vmatprep.subr.bf16.mxu0 %v3007_v2 }
0x1d28   :  { %v1900_v59 = vpop.xlane.xlu0 %1899 }
0x1d29   :  { %v1904_v18 = vsub.f32 %v1892_v50, %v1900_v59 }
0x1d2a   :  { %v1903_v60 = vpop.xlane.xlu1 %1902 }
0x1d2b   :  { %v1906_v62 = vmul.f32 1.442695, %v1904_v18  ;;  %v1905_v63 = vsub.f32 %v1895_v54, %v1903_v60  ;;  %v2476_v18 = vld [vmem:[%s3672_s10 + $0x1] ss:$0 sm:$0xff] }
0x1d2d   :  { %2960 = vpow2.f32 %v1906_v62  ;;  %v1908_v1 = vmul.f32 1.442695, %v1905_v63 }
0x1d2e   :  { %v1922_v21 = vpop.permute.xlu1 %1921 }
0x1d2f   :  { %2962 = vpow2.f32 %v1908_v1  ;;  %2793 = vmatpush3.bf16.msra.mxu1 %v1922_v21  ;;  %v2477_v1 = vld [vmem:[%s3673_s11 + $0x1] ss:$0 sm:$0xff] }
0x1d30   :  { %2804 = vmatprep.subr.bf16.mxu1 %v3007_v2 }
0x1d37   :  { %v2961_v4 = vpop.eup %2960 }
0x1d38   :  { %v1910_v6 = vsel %vm330_vm6, %v2961_v4, 0.0 }
0x1d39   :  { %v2963_v9 = vpop.eup %2962  ;;  %1911 = vadd.xlane.f32.xlu0 %v1910_v6 }
0x1d3a   :  { %v1913_v10 = vsel %vm330_vm6, %v2963_v9, 0.0 }
0x1d3d   :  { %1914 = vadd.xlane.f32.xlu0 %v1913_v10  ;;  %v2878_v10 = vld [vmem:[%s3676_s14 + $0x40] sm:$0xff]  }
0x1d67   :  { %v1838_v13 = vpop.f32.mrb[56].mxu1 }
0x1d68   :  { %v1845_v14 = vadd.f32 %v1838_v13, %v3502_v7  ;;  %v2784_v53 = vpop.f32.mrb[57].mxu1  ;;  %v2881_v13 = vld [vmem:[%s3676_s14 + $0x58] sm:$0xff]  }
0x1d69   :  { %v1841_v15 = vpop.f32.mrb[58].mxu1  ;;  %v2883_v53 = vld [vmem:[%s3676_s14 + $0x68] sm:$0xff]  }
0x1d6a   :  { %v1846_v16 = vadd.f32 %v1841_v15, %v3504_v11  ;;  %v2785_v55 = vpop.f32.mrb[59].mxu1  ;;  %v2884_v15 = vld [vmem:[%s3676_s14 + $0x70] sm:$0xff]  }
0x1d6b   :  { %v2483_v55 = vld [vmem:[%s3675_s13 + $0x1] ss:$0 sm:$0xff] }
0x1dc6   :  { %v1912_v17 = vpop.xlane.xlu0 %1911 }
0x1dc7   :  { %2964 = vrcp.f32 %v1912_v17 }
0x1dca   :  { %v1915_v19 = vpop.xlane.xlu0 %1914 }
0x1dcb   :  { %2966 = vrcp.f32 %v1915_v19 }
0x1dd1   :  { %v2965_v20 = vpop.eup %2964 }
0x1dd2   :  { %v1918_v23 = vmul.f32 %v2965_v20, %v2961_v4 }
0x1dd5   :  { %v2967_v22 = vpop.eup %2966 }
0x1dd6   :  { %v1919_v25 = vmul.f32 %v2967_v22, %v2963_v9 }
0x1dd8   :  { %v1920_v26 = vpack.c.bf16 %v1919_v25, %v1918_v23 }
0x1dda   :  { %2795 = vmatmul.mubr.msk.bf16.vlgmr.msra.gmra.mrb[60].mxu1 %vm330_vm6, %v1920_v26 }
0x1ddb   :  { %2808 = vmatprep.mubr.msk.bf16.mxu1 %vm3008_vm0, %v3007_v2  ;;  %2805 = vmatpush3.bf16.msra.mxu1 %v2876_v48 }
0x1ddc   :  { %2806 = vmatprep.subr.bf16.mxu1 %v3007_v2 }
0x1ddf   :  { %2807 = vmatpush3.bf16.msra.mxu1 %v2877_v49 }
0x1de0   :  { %2832 = vmatprep.subr.bf16.mxu1 %v3007_v2 }
0x1ead   :  { %v1961_v7 = vpop.f32.mrb[60].mxu1 }
0x1eae   :  { %v2796_v28 = vpop.f32.mrb[61].mxu1 }
0x1eaf   :  { %v1964_v29 = vpop.f32.mrb[62].mxu1 }
0x1eb0   :  { %v1968_v30 = vpack.c.bf16 %v1964_v29, %v1961_v7  ;;  %v2797_v11 = vpop.f32.mrb[63].mxu1 }
0x1eb2   :  { %2801 = vmatmul.mubr.msk.bf16.vlgmr.msra.gmra.mrb[48].mxu0 %vm282_vm5, %v1968_v30 }
0x1eb3   :  { %2828 = vmatprep.mubr.msk.bf16.mxu0 %vm3008_vm0, %v3007_v2  ;;  %2813 = vmatpush3.bf16.msra.mxu0 %v2878_v10 }
0x1eb4   :  { %2814 = vmatprep.subr.bf16.mxu0 %v3007_v2 }
0x1eb7   :  { %2815 = vmatpush3.bf16.msra.mxu0 %v2879_v46 }
0x1eb8   :  { %2816 = vmatprep.subr.bf16.mxu0 %v3007_v2 }
0x1ebb   :  { %2817 = vmatpush3.bf16.msra.mxu0 %v2880_v12  ;;  %v2513_v12 = vld [vmem:[%s3678_s16] ss:$0 sm:$0xff]  ;;  %s2982_s16 = scalar_lea.vmem %s2394_s23, 256 }
0x1ebc   :  { %2818 = vmatprep.subr.bf16.mxu0 %v3007_v2  ;;  %p2983_p0 = scmp.ne.s32.totalorder %s2394_s23, %s2982_s16  ;;  %p2988_p2 = scmp.lt.s32.totalorder %s2982_s16, %s2982_s16 }
0x1ebe   :  { %p2989_p3 = por %p2988_p2, %p2987_p1 }
0x1ebf   :  { %2819 = vmatpush3.bf16.msra.mxu0 %v2881_v13 }
0x1ec0   :  { %2820 = vmatprep.subr.bf16.mxu0 %v3007_v2  ;;  %p2990_p4 = pnand %p2989_p3, %p2983_p0 }
0x1f85   :  { %v2009_v31 = vpop.f32.mrb[48].mxu0 }
0x1f86   :  { %v2016_v32 = vadd.f32 %v2009_v31, %v1845_v14  ;;  %v2802_v33 = vpop.f32.mrb[49].mxu0  ;;  %v2882_v14 = vld [vmem:[%s3676_s14 + $0x60] sm:$0xff]  }
0x1f87   :  { %v2012_v35 = vpop.f32.mrb[50].mxu0  ;;  %2821 = vmatpush3.bf16.msra.mxu0 %v2882_v14 }
0x1f88   :  { %v2018_v61 = vadd.f32 %v2016_v32, %v3401_v5  ;;  %v2017_v36 = vadd.f32 %v2012_v35, %v1846_v16  ;;  %v2803_v37 = vpop.f32.mrb[51].mxu0  ;;  %2822 = vmatprep.subr.bf16.mxu0 %v3007_v2  ;;  %v2885_v16 = vld [vmem:[%s3676_s14 + $0x78] sm:$0xff]  }
0x1f8a   :  { %v3563_v38 = vadd.f32 %v2473_v34, %v2018_v61  ;;  %v2019_v0 = vadd.f32 %v2017_v36, %v3404_v8 }
0x1f8b   :  { %2823 = vmatpush3.bf16.msra.mxu0 %v2883_v53 }
0x1f8c   :  { %v3566_v39 = vadd.f32 %v2473_v34, %v2019_v0  ;;  %v2034_v3 = vsel %vm162_vm4, %v3563_v38, 0.0  ;;  %2824 = vmatprep.subr.bf16.mxu0 %v3007_v2 }
0x1f8d   :  { %2035 = vadd.xlane.f32.xlu0 %v2034_v3 }
0x1f8e   :  { %v2037_v40 = vsel %vm162_vm4, %v3566_v39, 0.0 }
0x1f8f   :  { %2825 = vmatpush3.bf16.msra.mxu0 %v2884_v15 }
0x1f90   :  { %2826 = vmatprep.subr.bf16.mxu0 %v3007_v2 }
0x1f91   :  { %2038 = vadd.xlane.f32.xlu0 %v2037_v40 }
0x1f93   :  { %2827 = vmatpush3.bf16.msra.mxu0 %v2885_v16 }
0x201a   :  { %v2036_v41 = vpop.xlane.xlu0 %2035 }
0x201b   :  { %v2040_v24 = vmul.f32 0.03125, %v2036_v41 }
0x201d   :  { %v2042_v5 = vsub.f32 %v3563_v38, %v2040_v24 }
0x201e   :  { %v2039_v27 = vpop.xlane.xlu0 %2038 }
0x201f   :  { %v2041_v42 = vmul.f32 0.03125, %v2039_v27  ;;  %v2044_v43 = vmul.f32 %v2042_v5, %v2042_v5 }
0x2021   :  { %v2043_v44 = vsub.f32 %v3566_v39, %v2041_v42  ;;  %v2046_v8 = vsel %vm162_vm4, %v2044_v43, 0.0 }
0x2022   :  { %2047 = vadd.xlane.f32.xlu0 %v2046_v8 }
0x2023   :  { %v2045_v45 = vmul.f32 %v2043_v44, %v2043_v44 }
0x2025   :  { %v2049_v47 = vsel %vm162_vm4, %v2045_v45, 0.0 }
0x2026   :  { %2050 = vadd.xlane.f32.xlu0 %v2049_v47 }
0x20af   :  { %v2048_v50 = vpop.xlane.xlu0 %2047 }
0x20b0   :  { %v2052_v51 = vmul.f32 0.03125, %v2048_v50 }
0x20b2   :  { %v2054_v52 = vadd.f32 1e-05, %v2052_v51 }
0x20b3   :  { %v2051_v54 = vpop.xlane.xlu0 %2050 }
0x20b4   :  { %2968 = vrsqrt.f32 %v2054_v52  ;;  %v2053_v56 = vmul.f32 0.03125, %v2051_v54 }
0x20b6   :  { %v2055_v57 = vadd.f32 1e-05, %v2053_v56 }
0x20b8   :  { %2970 = vrsqrt.f32 %v2055_v57 }
0x20be   :  { %v2969_v58 = vpop.eup %2968 }
0x20bf   :  { %v2058_v59 = vmul.f32 %v2969_v58, %v2042_v5  ;;  %v2504_v5 = vld [vmem:[%s3677_s15 + $0x1] ss:$0 sm:$0xff] }
0x20c1   :  { %v2066_v62 = vmul.f32 %v2476_v18, %v2058_v59 }
0x20c2   :  { %v2971_v60 = vpop.eup %2970 }
0x20c3   :  { %v2059_v63 = vmul.f32 %v2971_v60, %v2043_v44  ;;  %v2074_v4 = vadd.f32 %v2477_v1, %v2066_v62  ;;  %v2887_v62 = vld [vmem:[%s3680_s18 + $0x8] sm:$0xff]  }
0x20c5   :  { %v2067_v21 = vmul.f32 %v2476_v18, %v2059_v63 }
0x20c7   :  { %v2075_v6 = vadd.f32 %v2477_v1, %v2067_v21 }
0x20c9   :  { %v2076_v9 = vpack.c.bf16 %v2075_v6, %v2074_v4 }
0x20cb   :  { %2809 = vmatmul.mubr.msk.bf16.vlgmr.msra.gmra.mrb[64].mxu1 %vm162_vm4, %v2076_v9 }
0x20cc   :  { %2836 = vmatprep.mubr.msk.bf16.mxu1 %vm3008_vm0, %v3007_v2 }
0x219e   :  { %v2139_v17 = vpop.f32.mrb[64].mxu1 }
0x219f   :  { %v2140_v19 = vadd.f32 %v2483_v55, %v2139_v17  ;;  %v2810_v20 = vpop.f32.mrb[65].mxu1 }
0x21a0   :  { %v2142_v22 = vpop.f32.mrb[66].mxu1 }
0x21a1   :  { %v2148_v23 = vmul.f32 0.044715, %v2140_v19  ;;  %v2143_v25 = vadd.f32 %v2483_v55, %v2142_v22  ;;  %v2811_v26 = vpop.f32.mrb[67].mxu1  ;;  %v2146_v37 = vmul.f32 0.5, %v2140_v19 }
0x21a3   :  { %v2150_v7 = vmul.f32 %v2148_v23, %v2140_v19  ;;  %v2149_v28 = vmul.f32 0.044715, %v2143_v25  ;;  %v2147_v0 = vmul.f32 0.5, %v2143_v25 }
0x21a5   :  { %v2152_v29 = vmul.f32 %v2150_v7, %v2140_v19  ;;  %v2151_v30 = vmul.f32 %v2149_v28, %v2143_v25 }
0x21a7   :  { %v2154_v11 = vadd.f32 %v2152_v29, %v2140_v19  ;;  %v2153_v31 = vmul.f32 %v2151_v30, %v2143_v25 }
0x21a9   :  { %v2156_v32 = vmul.f32 0.7978846, %v2154_v11  ;;  %v2155_v33 = vadd.f32 %v2153_v31, %v2143_v25 }
0x21ab   :  { %2972 = vtanh.f32 %v2156_v32  ;;  %v2157_v34 = vmul.f32 0.7978846, %v2155_v33 }
0x21ad   :  { %2974 = vtanh.f32 %v2157_v34 }
0x21b5   :  { %v2973_v35 = vpop.eup %2972 }
0x21b6   :  { %v2160_v61 = vadd.f32 1.0, %v2973_v35 }
0x21b7   :  { %v2975_v36 = vpop.eup %2974 }
0x21b8   :  { %v2161_v3 = vadd.f32 1.0, %v2975_v36  ;;  %v2162_v40 = vmul.f32 %v2160_v61, %v2146_v37 }
0x21ba   :  { %v2163_v41 = vmul.f32 %v2161_v3, %v2147_v0 }
0x21bc   :  { %v2164_v24 = vpack.c.bf16 %v2163_v41, %v2162_v40 }
0x21be   :  { %2829 = vmatmul.mubr.bf16.vlgmr.msra.gmra.mrb[52].mxu0 %v2164_v24 }
0x2291   :  { %v2272_v27 = vpop.f32.mrb[52].mxu0 }
0x2292   :  { %v2273_v42 = vadd.f32 %v2504_v5, %v2272_v27  ;;  %v2830_v43 = vpop.f32.mrb[53].mxu0 }
0x2293   :  { %v2275_v44 = vpop.f32.mrb[54].mxu0 }
0x2294   :  { %v2276_v8 = vadd.f32 %v2504_v5, %v2275_v44  ;;  %v2831_v45 = vpop.f32.mrb[55].mxu0  ;;  %v2279_v47 = vadd.f32 %v2273_v42, %v3563_v38 }
0x2296   :  { %v2283_v48 = vsel %vm162_vm4, %v2279_v47, 0.0  ;;  %v2280_v49 = vadd.f32 %v2276_v8, %v3566_v39  ;;  %v2886_v39 = vld [vmem:[%s3680_s18] sm:$0xff]  }
0x2297   :  { %2284 = vadd.xlane.f32.xlu1 %v2283_v48  ;;  %2833 = vmatpush3.bf16.msra.mxu1 %v2886_v39 }
0x2298   :  { %v2286_v50 = vsel %vm162_vm4, %v2280_v49, 0.0  ;;  %2834 = vmatprep.subr.bf16.mxu1 %v3007_v2  ;;  %v2514_v2 = vld [vmem:[%s3679_s17] ss:$0 sm:$0xff] }
0x2299   :  { %2287 = vadd.xlane.f32.xlu0 %v2286_v50 }
0x229b   :  { %2835 = vmatpush3.bf16.msra.mxu1 %v2887_v62 }
0x2324   :  { %v2285_v51 = vpop.xlane.xlu1 %2284 }
0x2325   :  { %v2289_v52 = vmul.f32 0.03125, %v2285_v51 }
0x2326   :  { %v2288_v54 = vpop.xlane.xlu0 %2287 }
0x2327   :  { %v2291_v56 = vsub.f32 %v2279_v47, %v2289_v52  ;;  %v2290_v57 = vmul.f32 0.03125, %v2288_v54 }
0x2329   :  { %v2292_v58 = vsub.f32 %v2280_v49, %v2290_v57  ;;  %v2293_v59 = vmul.f32 %v2291_v56, %v2291_v56 }
0x232b   :  { %v2295_v18 = vsel %vm162_vm4, %v2293_v59, 0.0  ;;  %v2294_v60 = vmul.f32 %v2292_v58, %v2292_v58 }
0x232c   :  { %2296 = vadd.xlane.f32.xlu0 %v2295_v18 }
0x232d   :  { %v2298_v38 = vsel %vm162_vm4, %v2294_v60, 0.0 }
0x2330   :  { %2299 = vadd.xlane.f32.xlu0 %v2298_v38 }
0x23b9   :  { %v2297_v63 = vpop.xlane.xlu0 %2296 }
0x23ba   :  { %v2301_v1 = vmul.f32 0.03125, %v2297_v63 }
0x23bc   :  { %v2303_v21 = vadd.f32 1e-05, %v2301_v1 }
0x23bd   :  { %v2300_v4 = vpop.xlane.xlu0 %2299 }
0x23be   :  { %2976 = vrsqrt.f32 %v2303_v21  ;;  %v2302_v6 = vmul.f32 0.03125, %v2300_v4 }
0x23c0   :  { %v2304_v9 = vadd.f32 1e-05, %v2302_v6 }
0x23c2   :  { %2978 = vrsqrt.f32 %v2304_v9 }
0x23c8   :  { %v2977_v10 = vpop.eup %2976 }
0x23c9   :  { %v2307_v46 = vmul.f32 %v2977_v10, %v2291_v56 }
0x23cb   :  { %v2315_v14 = vmul.f32 %v2513_v12, %v2307_v46 }
0x23cc   :  { %v2979_v13 = vpop.eup %2978 }
0x23cd   :  { %v2308_v53 = vmul.f32 %v2979_v13, %v2292_v58  ;;  %v2323_v16 = vadd.f32 %v2514_v2, %v2315_v14 }
0x23cf   :  { %v2316_v15 = vmul.f32 %v2513_v12, %v2308_v53 }
0x23d1   :  { %v2324_v55 = vadd.f32 %v2514_v2, %v2316_v15 }
0x23d3   :  { %v2325_v17 = vpack.c.bf16 %v2324_v55, %v2323_v16 }
0x23d5   :  { %2837 = vmatmul.mubr.msk.bf16.vlgmr.msra.gmra.mrb[68].mxu1 %vm162_vm4, %v2325_v17 }
0x24a8   :  { %v2379_v19 = vpop.f32.mrb[68].mxu1 }
0x24a9   :  { %2386 = vst [vmem:[#allocation2] sm:$0xff] %v2379_v19  ;;  %v2838_v20 = vpop.f32.mrb[69].mxu1 }
0x24aa   :  { %v2382_v22 = vpop.f32.mrb[70].mxu1 }
0x24ab   :  { %2387 = vst [vmem:[#allocation2 + $0x8] sm:$0xff] %v2382_v22  ;;  %v2839_v23 = vpop.f32.mrb[71].mxu1 }
0x24ac   :  { %2993 = shalt.err (!%p2990_p4)
}
0x24ad   :  { %s2994_s24 = scalar_lea.hbm %s3681_s19, 256 }
0x24ae   :  { %p2995_p5 = scmp.ne.s32.totalorder %s3681_s19, %s2994_s24  ;;  %p2998_p6 = scmp.lt.u32.totalorder %s2994_s24, %s3681_s19 }
0x24b0   :  { %p3000_p7 = pnand %p2998_p6, %p2995_p5 }
0x24b2   :  { %3003 = shalt.err (!%p3000_p7)
}
0x24b3   :  { %s3021_s1 = smov 128   ;;  %s3022_s30 = smov 8  }
0x24b4   :  { %2399 = dma.vmem_to_hbm [thread:$0]  %s2394_s23, 256, %s3681_s19, [#allocation3], %s3021_s1, %s3021_s1, %s3022_s30  }
0x24b5   :  { %3004 = dma.done.wait [#allocation3], 256  }
0x24b6   :  { %3005 = vsyncadd [#allocation3], 4294967040 }
0x24b7   :  { %2403 = vsyncpa [#allocation3], 1 }

</bundles_post_ra>
